<compile_context>
chip_gen: v5e
topology: v5e:2x2
jax: 0.10.0
libtpu: 0.0.40
codegen_flags: <defaults>
</compile_context>

<pallas_src>
import functools
import math

import jax
import jax.numpy as jnp
from jax.experimental import pallas as pl
from jax.experimental.pallas import tpu as pltpu

_LANE = 128
_MAX_TM = 1024            # HBM roofline saturates around 512-row tiles
_MAX_FOLD = 16            # only fold when D % 8 == 0 (g = 128/gcd(D,128) <= 16)
_MAX_FOLD_WIDTH = 8192    # cap on folded lane width (keeps the min tile small)
_SEG_COLS = 128           # segment matrices padded to a full lane tile (MXU)


def _round_up(x, m):
    return ((x + m - 1) // m) * m


def _sublane_min(itemsize):
    """Native sublane tile: f32 -> 8 rows, bf16 -> 16, int8/fp8 -> 32."""
    return max(8, 32 // max(int(itemsize), 1))


def _vmem_capacity_bytes():
    """Physical per-core VMEM; conservative fallback = 64 MiB (v7x)."""
    try:
        info = pltpu.get_tpu_info()
        cap = getattr(info, "vmem_capacity_bytes", None)
        if cap:
            return int(cap)
    except Exception:
        pass
    return 64 * 1024 * 1024


def _fold_factor(d):
    """Row-fold factor g so the block lane width g*d is a multiple of 128."""
    if d % _LANE == 0:
        return 1
    g = _LANE // math.gcd(d, _LANE)
    if g <= _MAX_FOLD and g * d <= _MAX_FOLD_WIDTH:
        return g
    return 1  # fall back to the lane-masked path


def _layer_norm_kernel(x_ref, w_ref, b_ref, o_ref, *, eps, use_mean, d, g):
    """One row tile of LayerNorm.

    x_ref : (tm, W) tile.    w_ref / b_ref : (1, W) affine params (f32).
    g > 1          : row-folded layout, W == g*d (lane dense). Each physical
                     row holds g logical samples; per-sample stats via one-hot
                     segment matmuls on the MXU -> no lane masks anywhere.
    g == 1, W == d : already lane dense; plain reductions.
    g == 1, W > d  : lane-masked fallback (D not a multiple of 8).
    """
    W = x_ref.shape[-1]
    x = x_ref[...]
    w = w_ref[...].astype(jnp.float32)
    b = b_ref[...].astype(jnp.float32)
    inv_d = jnp.float32(1.0 / d)
    eps_f = jnp.float32(eps)
    hi = jax.lax.Precision.HIGHEST  # exact f32 contraction on the MXU

    if g > 1:
        # One-hot segment matrices, padded to 128 columns/rows so every matmul
        # has native tile shapes. Column/row j selects lanes [j*d, (j+1)*d).
        lane_w = jax.lax.broadcasted_iota(jnp.int32, (W, _SEG_COLS), 0)
        col_w = jax.lax.broadcasted_iota(jnp.int32, (W, _SEG_COLS), 1)
        seg = ((lane_w >= col_w * d) & (lane_w < (col_w + 1) * d)).astype(
            jnp.float32)                                            # (W, 128)
        row_g = jax.lax.broadcasted_iota(jnp.int32, (_SEG_COLS, W), 0)
        lane_g = jax.lax.broadcasted_iota(jnp.int32, (_SEG_COLS, W), 1)
        segT = ((lane_g >= row_g * d) & (lane_g < (row_g + 1) * d)).astype(
            jnp.float32)                                            # (128, W)

        # Segmented sums on the MXU with f32 accumulation; bf16 stays native
        # (one-hot weights are exact in bf16).
        first_prec = hi if x.dtype == jnp.float32 else None
        mean_s = jnp.dot(x, seg.astype(x.dtype), precision=first_prec,
                         preferred_element_type=jnp.float32) * inv_d  # (tm,128)
        mean_b = jnp.dot(mean_s, segT, precision=hi,
                         preferred_element_type=jnp.float32)          # (tm, W)
        xc = x.astype(jnp.float32) - mean_b
        var_s = jnp.dot(xc * xc, seg, precision=hi,
                        preferred_element_type=jnp.float32) * inv_d   # (tm,128)
        rstd_b = jnp.dot(jax.lax.rsqrt(var_s + eps_f), segT, precision=hi,
                         preferred_element_type=jnp.float32)          # (tm, W)
        y = (xc if use_mean else x.astype(jnp.float32)) * rstd_b
    elif W == d:
        xf = x.astype(jnp.float32)
        mean = jnp.sum(xf, axis=-1, keepdims=True) * inv_d
        xc = xf - mean
        var = jnp.sum(xc * xc, axis=-1, keepdims=True) * inv_d
        y = (xc if use_mean else xf) * jax.lax.rsqrt(var + eps_f)
    else:
        # Lane-padded block (W > d): padded lanes hold unspecified data ->
        # mask them out of the reductions; the boundary-lane store is masked.
        xf = x.astype(jnp.float32)
        lane_mask = jax.lax.broadcasted_iota(jnp.int32, xf.shape, 1) < d
        xm = jnp.where(lane_mask, xf, 0.0)
        mean = jnp.sum(xm, axis=-1, keepdims=True) * inv_d
        xc = xf - mean
        xcm = jnp.where(lane_mask, xc, 0.0)
        var = jnp.sum(xcm * xcm, axis=-1, keepdims=True) * inv_d
        y = (xc if use_mean else xf) * jax.lax.rsqrt(var + eps_f)

    o_ref[...] = (y * w + b).astype(o_ref.dtype)


def _choose_tm(n_f, W, g, itemsize, sublane, vmem_budget):
    # Double-buffered in + out tiles at input dtype plus ~5 f32 working copies
    # of the tile (centered, squared, broadcast stats, output, slack).
    per_row = W * (4 * itemsize + 20)
    fixed = 4 * W * 4                          # (1, W) f32 weight/bias, 2 bufs
    if g > 1:
        fixed += 2 * W * _SEG_COLS * 4         # seg / segT one-hot matrices
    tm = (vmem_budget - fixed) // max(per_row, 1)
    tm = max(sublane, (tm // sublane) * sublane)
    tm = min(tm, _MAX_TM)
    # Keep >= 2 grid steps when there is enough work so the "parallel" row
    # axis can be sharded across v7x's two TensorCores.
    if n_f > sublane:
        tm = min(tm, _round_up((n_f + 1) // 2, sublane))
    return int(max(min(tm, n_f), sublane))


def layer_norm_block(x, weight=None, bias=None, *, eps=1e-5, mean=True,
                     w2=None, b2=None):
    """LayerNorm of a single TensorBlock's values.

    x:      (N, ..., F) array; stats reduce over all dims except the first.
    weight: (F,) scale, bias: (F,) shift  -- or pass pre-tiled (1, g*D) w2/b2.
    """
    orig_shape = x.shape
    orig_dtype = x.dtype
    n = orig_shape[0]
    f = orig_shape[-1]
    d = math.prod(orig_shape[1:])
    assert d % f == 0

    itemsize = jnp.dtype(orig_dtype).itemsize
    sublane = _sublane_min(itemsize)

    # Lane-dense layout: fold g rows onto the lane axis so every DMA row and
    # every store is a full-width (multiple of 128) access.
    g = _fold_factor(d)
    if g > 1:
        W = g * d
    elif d % _LANE == 0:
        W = d
    else:
        W = _round_up(d, _LANE)        # masked fallback block width

    # weight/bias broadcast over the LAST dim only -> tile across the
    # component dims and across the fold factor g.
    wp = g * d
    if w2 is None:
        w_vec = weight if weight is not None else jnp.ones((f,), jnp.float32)
        w2 = jnp.tile(w_vec.astype(jnp.float32), wp // f).reshape(1, wp)
    if b2 is None:
        b_vec = bias if bias is not None else jnp.zeros((f,), jnp.float32)
        b2 = jnp.tile(b_vec.astype(jnp.float32), wp // f).reshape(1, wp)
    assert w2.shape == (1, wp) and b2.shape == (1, wp)

    x2 = x.reshape(n, d)
    # Pad rows so the folded row count is a (dtype-native) sublane multiple;
    # padded rows are zeros -> finite stats, discarded after the call.
    n_f = _round_up(-(-n // g), sublane)
    n_pad = n_f * g
    if n_pad != n:
        x2 = jnp.pad(x2, ((0, n_pad - n), (0, 0)))
    if g > 1:
        x2 = x2.reshape(n_f, W)        # contiguous fold: free in XLA

    out_cols = W if g > 1 else d

    # Size tiles against this generation's VMEM (v7x: 64 MiB, v5e/v6e: 128).
    cap = _vmem_capacity_bytes()
    vmem_limit = min(int(cap * 0.8), 100 * 1024 * 1024)
    vmem_budget = max(vmem_limit - (12 << 20), 2 << 20)   # Mosaic scratch slack
    tm = _choose_tm(n_f, W, g, itemsize, sublane, vmem_budget)
    # TODO(synk): for D so wide that even a (sublane, W) tile blows the VMEM
    # budget (mostly v7x, 64 MiB), add a second "arbitrary" grid axis over D
    # with running sum / sum-of-squares accumulators in VMEM scratch.

    grid = (pl.cdiv(n_f, tm),)
    kernel = functools.partial(_layer_norm_kernel, eps=float(eps),
                               use_mean=bool(mean), d=int(d), g=int(g))

    out = pl.pallas_call(
        kernel,
        out_shape=jax.ShapeDtypeStruct((n_f, out_cols), orig_dtype),
        grid_spec=pltpu.PrefetchScalarGridSpec(
            num_scalar_prefetch=0,
            grid=grid,
            in_specs=[
                pl.BlockSpec((tm, W), lambda i: (i, 0)),
                pl.BlockSpec((1, W), lambda i: (0, 0)),
                pl.BlockSpec((1, W), lambda i: (0, 0)),
            ],
            out_specs=pl.BlockSpec((tm, W), lambda i: (i, 0)),
        ),
        compiler_params=pltpu.CompilerParams(
            dimension_semantics=("parallel",),
            vmem_limit_bytes=int(vmem_limit),
        ),
    )(x2, w2, b2)

    out = out.reshape(n_pad, d)
    if n_pad != n:
        out = out[:n]
    return out.reshape(orig_shape)


class LayerNormMap:
    """Mimics metatensor LayerNorm: one _LayerNorm per key (block)."""

    def __init__(self, in_features_list, eps=1e-5, mean=True):
        self.in_features_list = list(in_features_list)
        self.eps = eps
        self.mean = mean
        # reset_parameters(): weight = ones, bias = zeros (deterministic)
        self.weights = [jnp.ones((f,), jnp.float32) for f in self.in_features_list]
        self.biases = [jnp.zeros((f,), jnp.float32) for f in self.in_features_list]
        self._tiled_cache = {}  # (block idx, tiled width) -> (w2, b2)

    def _tiled(self, idx, d):
        wp = _fold_factor(d) * d
        key = (idx, wp)
        if key not in self._tiled_cache:
            f = self.in_features_list[idx]
            w2 = jnp.tile(self.weights[idx], wp // f).reshape(1, wp)
            b2 = jnp.tile(self.biases[idx], wp // f).reshape(1, wp)
            self._tiled_cache[key] = (w2, b2)
        return self._tiled_cache[key]

    def __call__(self, blocks):
        # TODO(synk): TensorMap keys/Labels metadata and the gradients-present
        # check are host-side bookkeeping with no Pallas equivalent; only the
        # per-block values are transformed. Blocks sharing a folded width could
        # also be batched into one pallas_call to amortize launch overhead.
        outs = []
        for i, x in enumerate(blocks):
            d = math.prod(x.shape[1:])
            w2, b2 = self._tiled(i, d)
            outs.append(layer_norm_block(x, eps=self.eps, mean=self.mean,
                                         w2=w2, b2=b2))
        return outs


def _layer_norm_ref(x, w, b, eps, mean):
    dims = tuple(range(1, x.ndim))
    xf = x.astype(jnp.float32)
    mu = jnp.mean(xf, axis=dims, keepdims=True)
    var = jnp.mean((xf - mu) ** 2, axis=dims, keepdims=True)
    y = (xf - mu) if mean else xf
    y = y / jnp.sqrt(var + eps)
    y = y * w + b
    return y.astype(x.dtype)


if __name__ == "__main__":
    key = jax.random.PRNGKey(0)
    k0, k1, k2, k3 = jax.random.split(key, 4)

    # Simulated TensorMap with 4 blocks (keys):
    #  block 0: (16, 32)     f32  -> D=32,  folded g=4 (W=128, lane dense)
    #  block 1: (10, 3, 64)  f32  -> D=192, folded g=2 (W=384, lane dense)
    #  block 2: (24, 2, 128) f32  -> D=256, g=1, already lane dense
    #  block 3: (12, 48)     bf16 -> D=48,  folded g=8, bf16 sublane tile = 16
    x0 = jax.random.normal(k0, (16, 32), jnp.float32) * 2.0 + 0.5
    x1 = jax.random.normal(k1, (10, 3, 64), jnp.float32) * 0.7 - 1.3
    x2 = jax.random.normal(k2, (24, 2, 128), jnp.float32) * 1.1 + 0.2
    x3 = (jax.random.normal(k3, (12, 48), jnp.float32) * 1.5 + 0.3).astype(
        jnp.bfloat16)
    xs = [x0, x1, x2, x3]
    feats = [32, 64, 128, 48]
    tols = [1e-5, 1e-5, 1e-5, 6e-2]   # bf16 output: tolerance of a couple ulp

    ln = LayerNormMap(in_features_list=feats, eps=1e-5, mean=True)
    outs = [jax.block_until_ready(o) for o in ln(xs)]
    refs = [_layer_norm_ref(x, ln.weights[i], ln.biases[i], 1e-5, True)
            for i, x in enumerate(xs)]
    for x, o, r, tol in zip(xs, outs, refs, tols):
        assert o.shape == x.shape and o.dtype == x.dtype
        err = jnp.max(jnp.abs(o.astype(jnp.float32) - r.astype(jnp.float32)))
        assert err < tol, err

    # mean=False path (scale by 1/sqrt(var+eps) without centering).
    ln_nm = LayerNormMap(in_features_list=feats, eps=1e-5, mean=False)
    outs_nm = [jax.block_until_ready(o) for o in ln_nm(xs)]
    refs_nm = [_layer_norm_ref(x, ln_nm.weights[i], ln_nm.biases[i], 1e-5, False)
               for i, x in enumerate(xs)]
    for o, r, tol in zip(outs_nm, refs_nm, tols):
        err = jnp.max(jnp.abs(o.astype(jnp.float32) - r.astype(jnp.float32)))
        assert err < tol, err

    print("KERNEL_OK")
</pallas_src>

<mosaic_0001>
module attributes {stable_mosaic.version = 11 : i64} {
  func.func @_layer_norm_kernel(%arg0: i32, %arg1: memref<8x128xf32, #tpu.memory_space<vmem>>, %arg2: memref<1x128xf32, #tpu.memory_space<vmem>>, %arg3: memref<1x128xf32, #tpu.memory_space<vmem>>, %arg4: memref<8x128xf32, #tpu.memory_space<vmem>>) attributes {dimension_semantics = [#tpu.dimension_semantics<parallel>], iteration_bounds = array<i64: 1>, scalar_prefetch = 0 : i64, scratch_operands = 0 : i64, tpu.core_type = #tpu.core_type<tc>, window_params = [{transform_indices = @transform_0, window_bounds = array<i64: 8, 128>}, {pipeline_mode = #tpu.pipeline_mode<synchronous>, transform_indices = @transform_1, window_bounds = array<i64: 1, 128>}, {pipeline_mode = #tpu.pipeline_mode<synchronous>, transform_indices = @transform_2, window_bounds = array<i64: 1, 128>}, {transform_indices = @transform_3, window_bounds = array<i64: 8, 128>}]} {
    %c0 = arith.constant 0 : index
    %c0_0 = arith.constant 0 : index
    %0 = vector.load %arg1[%c0, %c0_0] : memref<8x128xf32, #tpu.memory_space<vmem>>, vector<8x128xf32>
    %c0_1 = arith.constant 0 : index
    %c0_2 = arith.constant 0 : index
    %1 = vector.load %arg2[%c0_1, %c0_2] : memref<1x128xf32, #tpu.memory_space<vmem>>, vector<1x128xf32>
    %c0_3 = arith.constant 0 : index
    %c0_4 = arith.constant 0 : index
    %2 = vector.load %arg3[%c0_3, %c0_4] : memref<1x128xf32, #tpu.memory_space<vmem>>, vector<1x128xf32>
    %3 = tpu.iota {dimensions = array<i32: 0>} : vector<128x128xi32>
    %4 = tpu.iota {dimensions = array<i32: 1>} : vector<128x128xi32>
    %c32_i32 = arith.constant 32 : i32
    %5 = vector.broadcast %c32_i32 : i32 to vector<128x128xi32>
    %6 = arith.muli %4, %5 : vector<128x128xi32>
    %7 = arith.cmpi sge, %3, %6 : vector<128x128xi32>
    %c1_i32 = arith.constant 1 : i32
    %8 = vector.broadcast %c1_i32 : i32 to vector<128x128xi32>
    %9 = arith.addi %4, %8 : vector<128x128xi32>
    %c32_i32_5 = arith.constant 32 : i32
    %10 = vector.broadcast %c32_i32_5 : i32 to vector<128x128xi32>
    %11 = arith.muli %9, %10 : vector<128x128xi32>
    %12 = arith.cmpi slt, %3, %11 : vector<128x128xi32>
    %13 = arith.andi %7, %12 : vector<128x128xi1>
    %14 = arith.extui %13 : vector<128x128xi1> to vector<128x128xi32>
    %15 = arith.sitofp %14 : vector<128x128xi32> to vector<128x128xf32>
    %16 = tpu.iota {dimensions = array<i32: 0>} : vector<128x128xi32>
    %17 = tpu.iota {dimensions = array<i32: 1>} : vector<128x128xi32>
    %c32_i32_6 = arith.constant 32 : i32
    %18 = vector.broadcast %c32_i32_6 : i32 to vector<128x128xi32>
    %19 = arith.muli %16, %18 : vector<128x128xi32>
    %20 = arith.cmpi sge, %17, %19 : vector<128x128xi32>
    %c1_i32_7 = arith.constant 1 : i32
    %21 = vector.broadcast %c1_i32_7 : i32 to vector<128x128xi32>
    %22 = arith.addi %16, %21 : vector<128x128xi32>
    %c32_i32_8 = arith.constant 32 : i32
    %23 = vector.broadcast %c32_i32_8 : i32 to vector<128x128xi32>
    %24 = arith.muli %22, %23 : vector<128x128xi32>
    %25 = arith.cmpi slt, %17, %24 : vector<128x128xi32>
    %26 = arith.andi %20, %25 : vector<128x128xi1>
    %27 = arith.extui %26 : vector<128x128xi1> to vector<128x128xi32>
    %28 = arith.sitofp %27 : vector<128x128xi32> to vector<128x128xf32>
    %cst = arith.constant dense<0.000000e+00> : vector<8x128xf32>
    %29 = tpu.matmul %0, %15, %cst {dimension_numbers = #tpu.dot_dimension_numbers<[1], [0], [0], [1], [0, 0, 1, 1], [], []>, precision = #tpu.contract_precision<fp32>} : vector<8x128xf32>, vector<128x128xf32>, vector<8x128xf32> -> vector<8x128xf32>
    %cst_9 = arith.constant 3.125000e-02 : f32
    %30 = vector.broadcast %cst_9 : f32 to vector<8x128xf32>
    %31 = arith.mulf %29, %30 : vector<8x128xf32>
    %cst_10 = arith.constant dense<0.000000e+00> : vector<8x128xf32>
    %32 = tpu.matmul %31, %28, %cst_10 {dimension_numbers = #tpu.dot_dimension_numbers<[1], [0], [0], [1], [0, 0, 1, 1], [], []>, precision = #tpu.contract_precision<fp32>} : vector<8x128xf32>, vector<128x128xf32>, vector<8x128xf32> -> vector<8x128xf32>
    %33 = arith.subf %0, %32 : vector<8x128xf32>
    %34 = arith.mulf %33, %33 : vector<8x128xf32>
    %cst_11 = arith.constant dense<0.000000e+00> : vector<8x128xf32>
    %35 = tpu.matmul %34, %15, %cst_11 {dimension_numbers = #tpu.dot_dimension_numbers<[1], [0], [0], [1], [0, 0, 1, 1], [], []>, precision = #tpu.contract_precision<fp32>} : vector<8x128xf32>, vector<128x128xf32>, vector<8x128xf32> -> vector<8x128xf32>
    %cst_12 = arith.constant 3.125000e-02 : f32
    %36 = vector.broadcast %cst_12 : f32 to vector<8x128xf32>
    %37 = arith.mulf %35, %36 : vector<8x128xf32>
    %cst_13 = arith.constant 9.99999974E-6 : f32
    %38 = vector.broadcast %cst_13 : f32 to vector<8x128xf32>
    %39 = arith.addf %37, %38 : vector<8x128xf32>
    %40 = math.rsqrt %39 : vector<8x128xf32>
    %cst_14 = arith.constant dense<0.000000e+00> : vector<8x128xf32>
    %41 = tpu.matmul %40, %28, %cst_14 {dimension_numbers = #tpu.dot_dimension_numbers<[1], [0], [0], [1], [0, 0, 1, 1], [], []>, precision = #tpu.contract_precision<fp32>} : vector<8x128xf32>, vector<128x128xf32>, vector<8x128xf32> -> vector<8x128xf32>
    %42 = arith.mulf %33, %41 : vector<8x128xf32>
    %43 = vector.broadcast %1 : vector<1x128xf32> to vector<8x128xf32>
    %44 = arith.mulf %42, %43 : vector<8x128xf32>
    %45 = vector.broadcast %2 : vector<1x128xf32> to vector<8x128xf32>
    %46 = arith.addf %44, %45 : vector<8x128xf32>
    %c0_15 = arith.constant 0 : index
    %c0_16 = arith.constant 0 : index
    %47 = vector.load %arg4[%c0_15, %c0_16] : memref<8x128xf32, #tpu.memory_space<vmem>>, vector<8x128xf32>
    tpu.vector_store %arg4[%c0_15, %c0_16], %46 {strides = array<i32>} : memref<8x128xf32, #tpu.memory_space<vmem>>, vector<8x128xf32>,
    return
  }
  func.func @transform_0(%arg0: i32) -> (i32, i32) {
    %c0_i32 = arith.constant 0 : i32
    %c0_i32_0 = arith.constant 0 : i32
    return %arg0, %c0_i32 : i32, i32
  }
  func.func @transform_1(%arg0: i32) -> (i32, i32) {
    %c0_i32 = arith.constant 0 : i32
    %c0_i32_0 = arith.constant 0 : i32
    %c0_i32_1 = arith.constant 0 : i32
    return %c0_i32, %c0_i32_0 : i32, i32
  }
  func.func @transform_2(%arg0: i32) -> (i32, i32) {
    %c0_i32 = arith.constant 0 : i32
    %c0_i32_0 = arith.constant 0 : i32
    %c0_i32_1 = arith.constant 0 : i32
    return %c0_i32, %c0_i32_0 : i32, i32
  }
  func.func @transform_3(%arg0: i32) -> (i32, i32) {
    %c0_i32 = arith.constant 0 : i32
    %c0_i32_0 = arith.constant 0 : i32
    return %arg0, %c0_i32 : i32, i32
  }
}

</mosaic_0001>

<bundles_post_ra>
// kernel: tpu_custom_call.1
= control target key start
LH: loop header
LB: loop body
LE: loop exit
PB: predicated region body
PF: predicated region fallthrough
CT: control target
= control target key end

     0   :  { %8 = vsyncpa [#allocation3], 0  ;;  %s3656_s0 = inlined_call_operand.hbm [shape: f32[8,128], index: 0, kind: input, shape index: {}]   ;;  %s3657_s1 = inlined_call_operand.hbm [shape: f32[1,128], index: 1, kind: input, shape index: {}]   ;;  %s3658_s2 = inlined_call_operand.vmem [shape: f32[1,128], index: 2, kind: input, shape index: {}]   ;;  %s3659_s3 = inlined_call_operand.hbm [shape: f32[8,128], index: 3, kind: output, shape index: {}]  }
   0x1   :  { %9 = vsyncpa [#allocation6], 0 }
   0x2   :  { %10 = vsyncpa [#allocation4], 0  ;;  %s16_s14 = sshll.u32 %s3656_s0, 4  ;;  %s1995_s15 = smov [#allocation2]   ;;  %s17_s14 = int_to_ptr.hbm [resolvable:$true] %s16_s14 }
   0x3   :  { %s18_s16 = sshll.u32 %s1995_s15, 4  ;;  %s27_s19 = sshll.u32 %s3657_s1, 4  ;;  %s19_s16 = int_to_ptr.vmem [resolvable:$true] %s18_s16  ;;  %s28_s19 = int_to_ptr.hbm [resolvable:$true] %s27_s19 }
   0x4   :  { %21 = dma.hbm_to_vmem [thread:$0]  %s17_s14, 128, %s19_s16, [#allocation3]  }
   0x5   :  { %s1996_s20 = smov [#allocation5]  }
   0x6   :  { %s29_s21 = sshll.u32 %s1996_s20, 4  ;;  %s30_s21 = int_to_ptr.vmem [resolvable:$true] %s29_s21 }
   0x7   :  { %32 = dma.hbm_to_vmem [thread:$0]  %s28_s19, 16, %s30_s21, [#allocation6]  }
   0x8   :  { %1989 = dma.done.wait [#allocation3], 128  }
   0x9   :  { %1990 = vsyncadd [#allocation3], 4294967168  ;;  %v46_v0 = vlaneseq }
   0xa   :  { %1991 = dma.done.wait [#allocation6], 16  }
   0xb   :  { %1992 = vsyncadd [#allocation6], 4294967280  ;;  %v2026_v1 = vshrl.u32 %v46_v0, 7  ;;  %v2028_v2 = vand.u32 127, %v46_v0  ;;  %v3821_v13 = vmov 0  ;;  %v3696_v14 = vmov 1.0  }
   0xc   :  { %v3823_v15 = vmov 0  ;;  %v3660_v16 = vmov 0.0   ;;  %v3825_v21 = vmov 0  ;;  %v3828_v26 = vmov 0  ;;  %s1999_s22 = smov [#allocation7]   ;;  %s1672_s26 = sshll.u32 %s3659_s3, 4  ;;  %s1673_s26 = int_to_ptr.hbm [resolvable:$true] %s1672_s26 }
   0xd   :  { %3820 = vst [vmem:[#allocation11_spill] sm:$0xff] %v2026_v1  ;;  %v2031_v3 = vadd.s32 120, %v2026_v1  ;;  %v2034_v4 = vmul.u32 32, %v2028_v2  ;;  %v82_v5 = vadd.s32 1, %v2028_v2  ;;  %v2038_v6 = vadd.s32 112, %v2026_v1  ;;  %s1670_s23 = sshll.u32 %s1999_s22, 4  ;;  %s1671_s23 = int_to_ptr.vmem [resolvable:$true] %s1670_s23 }
   0xe   :  { %v2041_v7 = vadd.s32 104, %v2026_v1  ;;  %v2044_v8 = vadd.s32 96, %v2026_v1  ;;  %v2047_v9 = vadd.s32 88, %v2026_v1  ;;  %v2050_v10 = vadd.s32 80, %v2026_v1 }
   0xf   :  { %vm81_vm0 = vcmp.ge.s32.totalorder %v2031_v3, %v2034_v4  ;;  %v2054_v11 = vmul.u32 32, %v82_v5  ;;  %vm80_vm1 = vcmp.ge.s32.totalorder %v2038_v6, %v2034_v4  ;;  %v2059_v12 = vadd.s32 72, %v2026_v1 }
  0x10   :  { %vm79_vm2 = vcmp.ge.s32.totalorder %v2041_v7, %v2034_v4  ;;  %vm78_vm3 = vcmp.ge.s32.totalorder %v2044_v8, %v2034_v4  ;;  %vm77_vm4 = vcmp.ge.s32.totalorder %v2047_v9, %v2034_v4  ;;  %vm76_vm5 = vcmp.ge.s32.totalorder %v2050_v10, %v2034_v4 }
  0x11   :  { %vm99_vm6 = vcmp.lt.s32.totalorder %v2031_v3, %v2054_v11  ;;  %vm98_vm7 = vcmp.lt.s32.totalorder %v2038_v6, %v2054_v11  ;;  %vm97_vm8 = vcmp.lt.s32.totalorder %v2041_v7, %v2054_v11  ;;  %vm96_vm9 = vcmp.lt.s32.totalorder %v2044_v8, %v2054_v11 }
  0x12   :  { %vm2077_vm10 = vmand %vm81_vm0, %vm99_vm6  ;;  %vm95_vm11 = vcmp.lt.s32.totalorder %v2047_v9, %v2054_v11  ;;  %vm94_vm12 = vcmp.lt.s32.totalorder %v2050_v10, %v2054_v11  ;;  %vm75_vm13 = vcmp.ge.s32.totalorder %v2059_v12, %v2034_v4  ;;  %vm93_vm14 = vcmp.lt.s32.totalorder %v2059_v12, %v2054_v11 }
  0x13   :  { %v3822_v13 = vsel %vm2077_vm10, 4294967295, %v3821_v13  ;;  %1715 = vmatpush.msk.msra.mxu0 %vm2077_vm10, %v3696_v14  ;;  %vm2095_vm15 = vmand %vm80_vm1, %vm98_vm7  ;;  %v1698_v17 = vsel %vm2077_vm10, 1.0, %v3660_v16  ;;  %v2103_v18 = vadd.s32 64, %v2026_v1  ;;  %v2106_v19 = vadd.s32 56, %v2026_v1  ;;  %1731 = vmatpush.msk.msra.mxu3 %vm2077_vm10, %v3696_v14 }
  0x14   :  { %v3824_v15 = vsel %vm2095_vm15, 4294967295, %v3823_v15  ;;  %v2109_v20 = vadd.s32 48, %v2026_v1  ;;  %vm2120_vm0 = vmand %vm79_vm2, %vm97_vm8  ;;  %v2124_v22 = vsub.f32 %v1698_v17, %v1698_v17  ;;  %v1697_v23 = vsel %vm2095_vm15, 1.0, %v3660_v16 }
  0x15   :  { %v3826_v21 = vsel %vm2120_vm0, 4294967295, %v3825_v21  ;;  %v2130_v24 = vadd.s32 40, %v2026_v1  ;;  %v2133_v25 = vadd.s32 32, %v2026_v1  ;;  %1716 = vmatpush.msk.msra.mxu0 %vm2095_vm15, %v3696_v14  ;;  %vm2144_vm1 = vmand %vm78_vm3, %vm96_vm9  ;;  %v2148_v27 = vsub.f32 %v1697_v23, %v1697_v23  ;;  %1732 = vmatpush.msk.msra.mxu3 %vm2095_vm15, %v3696_v14 }
  0x16   :  { %3827 = vst [vmem:[#allocation12_spill] sm:$0xff] %v2124_v22  ;;  %v3829_v26 = vsel %vm2144_vm1, 4294967295, %v3828_v26  ;;  %v1696_v28 = vsel %vm2120_vm0, 1.0, %v3660_v16  ;;  %vm74_vm2 = vcmp.ge.s32.totalorder %v2103_v18, %v2034_v4  ;;  %vm92_vm6 = vcmp.lt.s32.totalorder %v2103_v18, %v2054_v11  ;;  %vm2169_vm3 = vmand %vm77_vm4, %vm95_vm11  ;;  %420 = vmatpush.msra.mxu2 %v2124_v22 }
  0x17   :  { %3830 = vst [vmem:[#allocation13_spill] sm:$0xff] %v2148_v27  ;;  %v2161_v29 = vand.u32 4294901760, %v2124_v22  ;;  %v3832_v30 = vmov 0  ;;  %v2173_v31 = vsub.f32 %v1696_v28, %v1696_v28  ;;  %v1695_v32 = vsel %vm2144_vm1, 1.0, %v3660_v16  ;;  %1717 = vmatpush.msk.msra.mxu0 %vm2120_vm0, %v3696_v14  ;;  %vm2193_vm4 = vmand %vm76_vm5, %vm94_vm12  ;;  %1733 = vmatpush.msk.msra.mxu3 %vm2120_vm0, %v3696_v14 }
  0x18   :  { %v3833_v30 = vsel %vm2169_vm3, 4294967295, %v3832_v30  ;;  %vm73_vm7 = vcmp.ge.s32.totalorder %v2106_v19, %v2034_v4  ;;  %v2185_v33 = vand.u32 4294901760, %v2148_v27  ;;  %v3836_v34 = vmov 0  ;;  %vm2218_vm5 = vmand %vm75_vm13, %vm93_vm14  ;;  %423 = vmatpush.msra.mxu2 %v2148_v27 }
  0x19   :  { %3831 = vst [vmem:[#allocation14_spill] sm:$0xff] %v2161_v29  ;;  %v3837_v34 = vsel %vm2193_vm4, 4294967295, %v3836_v34  ;;  %v2197_v35 = vsub.f32 %v1695_v32, %v1695_v32  ;;  %v1694_v36 = vsel %vm2169_vm3, 1.0, %v3660_v16  ;;  %vm91_vm8 = vcmp.lt.s32.totalorder %v2106_v19, %v2054_v11  ;;  %1718 = vmatpush.msk.msra.mxu0 %vm2144_vm1, %v3696_v14  ;;  %1734 = vmatpush.msk.msra.mxu3 %vm2144_vm1, %v3696_v14  ;;  %vm2257_vm9 = vmand %vm74_vm2, %vm92_vm6 }
  0x1a   :  { %3834 = vst [vmem:[#allocation15_spill] sm:$0xff] %v2173_v31  ;;  %v320_v37 = vsub.f32 %v2124_v22, %v2161_v29  ;;  %v2210_v38 = vand.u32 4294901760, %v2173_v31  ;;  %v3840_v39 = vmov 0  ;;  %v2222_v40 = vsub.f32 %v1694_v36, %v1694_v36  ;;  %426 = vmatpush.msra.mxu2 %v2173_v31  ;;  %vm2290_vm12 = vmand %vm73_vm7, %vm91_vm8  ;;  %v43_v22 = vld [vmem:[#allocation2] sm:$0xff] }
  0x1b   :  { %3835 = vst [vmem:[#allocation16_spill] sm:$0xff] %v2185_v33  ;;  %v3841_v39 = vsel %vm2218_vm5, 4294967295, %v3840_v39  ;;  %v1693_v41 = vsel %vm2193_vm4, 1.0, %v3660_v16  ;;  %v326_v42 = vsub.f32 %v2148_v27, %v2185_v33  ;;  %v2234_v43 = vand.u32 4294901760, %v2197_v35  ;;  %1719 = vmatpush.msk.msra.mxu0 %vm2169_vm3, %v3696_v14  ;;  %1735 = vmatpush.msk.msra.mxu3 %vm2169_vm3, %v3696_v14 }
  0x1c   :  { %3838 = vst [vmem:[#allocation17_spill] sm:$0xff] %v2197_v35  ;;  %v2236_v44 = vsub.f32 %v1693_v41, %v1693_v41  ;;  %v1692_v45 = vsel %vm2218_vm5, 1.0, %v3660_v16  ;;  %v2244_v46 = vand.u32 4294901760, %v320_v37  ;;  %v332_v47 = vsub.f32 %v2173_v31, %v2210_v38  ;;  %429 = vmatpush.msra.mxu2 %v2197_v35 }
  0x1d   :  { %3839 = vst [vmem:[#allocation18_spill] sm:$0xff] %v2210_v38  ;;  %v2249_v48 = vand.u32 4294901760, %v2222_v40  ;;  %v3847_v49 = vmov 0  ;;  %v2261_v50 = vsub.f32 %v1692_v45, %v1692_v45  ;;  %v2264_v51 = vand.u32 4294901760, %v326_v42  ;;  %1720 = vmatpush.msk.msra.mxu0 %vm2193_vm4, %v3696_v14  ;;  %1736 = vmatpush.msk.msra.mxu3 %vm2193_vm4, %v3696_v14 }
  0x1e   :  { %3842 = vst [vmem:[#allocation19_spill] sm:$0xff] %v2222_v40  ;;  %v3848_v49 = vsel %vm2257_vm9, 4294967295, %v3847_v49  ;;  %v338_v52 = vsub.f32 %v2197_v35, %v2234_v43  ;;  %v2272_v53 = vand.u32 4294901760, %v2236_v44  ;;  %vm72_vm11 = vcmp.ge.s32.totalorder %v2109_v20, %v2034_v4  ;;  %322 = vmatpush.msra.mxu1 %v2244_v46  ;;  %432 = vmatpush.msra.mxu2 %v2222_v40 }
  0x1f   :  { %3843 = vst [vmem:[#allocation20_spill] sm:$0xff] %v2234_v43  ;;  %v2280_v54 = vand.u32 4294901760, %v332_v47  ;;  %v344_v55 = vsub.f32 %v2222_v40, %v2249_v48  ;;  %v3853_v56 = vmov 0  ;;  %v2295_v57 = vand.u32 4294901760, %v2261_v50  ;;  %1721 = vmatpush.msk.msra.mxu0 %vm2218_vm5, %v3696_v14  ;;  %1737 = vmatpush.msk.msra.mxu3 %vm2218_vm5, %v3696_v14 }
  0x20   :  { %3844 = vst [vmem:[#allocation21_spill] sm:$0xff] %v2236_v44  ;;  %v3854_v56 = vsel %vm2290_vm12, 4294967295, %v3853_v56  ;;  %vm90_vm13 = vcmp.lt.s32.totalorder %v2109_v20, %v2054_v11  ;;  %v350_v58 = vsub.f32 %v2236_v44, %v2272_v53  ;;  %v3856_v59 = vmov 0  ;;  %328 = vmatpush.msra.mxu1 %v2264_v51  ;;  %435 = vmatpush.msra.mxu2 %v2236_v44 }
  0x21   :  { %3845 = vst [vmem:[#allocation22_spill] sm:$0xff] %v2244_v46  ;;  %vm2305_vm14 = vmand %vm72_vm11, %vm90_vm13  ;;  %v1691_v60 = vsel %vm2257_vm9, 1.0, %v3660_v16  ;;  %vm71_vm2 = vcmp.ge.s32.totalorder %v2130_v24, %v2034_v4  ;;  %v2318_v61 = vand.u32 4294901760, %v338_v52  ;;  %v2320_v62 = vand.u32 4294901760, %v344_v55  ;;  %1722 = vmatpush.msk.msra.mxu0 %vm2257_vm9, %v3696_v14  ;;  %1738 = vmatpush.msk.msra.mxu3 %vm2257_vm9, %v3696_v14 }
  0x22   :  { %3846 = vst [vmem:[#allocation23_spill] sm:$0xff] %v2249_v48  ;;  %v3857_v59 = vsel %vm2305_vm14, 4294967295, %v3856_v59  ;;  %v2322_v63 = vsub.f32 %v1691_v60, %v1691_v60  ;;  %vm89_vm6 = vcmp.lt.s32.totalorder %v2130_v24, %v2054_v11  ;;  %v356_v0 = vsub.f32 %v2261_v50, %v2295_v57  ;;  %334 = vmatpush.msra.mxu1 %v2280_v54 }
  0x23   :  { %3849 = vst [vmem:[#allocation24_spill] sm:$0xff] %v2261_v50  ;;  %vm2332_vm7 = vmand %vm71_vm2, %vm89_vm6  ;;  %v3861_v5 = vmov 0  ;;  %v1690_v17 = vsel %vm2290_vm12, 1.0, %v3660_v16  ;;  %vm70_vm8 = vcmp.ge.s32.totalorder %v2133_v25, %v2034_v4  ;;  %vm88_vm11 = vcmp.lt.s32.totalorder %v2133_v25, %v2054_v11  ;;  %438 = vmatpush.msra.mxu2 %v2261_v50  ;;  %1723 = vmatpush.msk.msra.mxu0 %vm2290_vm12, %v3696_v14 }
  0x24   :  { %3850 = vst [vmem:[#allocation25_spill] sm:$0xff] %v2264_v51  ;;  %v3862_v5 = vsel %vm2332_vm7, 4294967295, %v3861_v5  ;;  %v2347_v23 = vand.u32 4294901760, %v350_v58  ;;  %v2350_v28 = vand.u32 4294901760, %v2322_v63  ;;  %v2352_v32 = vsub.f32 %v1690_v17, %v1690_v17  ;;  %vm2354_vm13 = vmand %vm70_vm8, %vm88_vm11  ;;  %340 = vmatpush.msra.mxu1 %v2318_v61  ;;  %1739 = vmatpush.msk.msra.mxu3 %vm2290_vm12, %v3696_v14 }
  0x25   :  { %3851 = vst [vmem:[#allocation26_spill] sm:$0xff] %v2272_v53  ;;  %v3866_v36 = vmov 0  ;;  %v1689_v37 = vsel %vm2305_vm14, 1.0, %v3660_v16  ;;  %v2368_v42 = vadd.s32 24, %v2026_v1  ;;  %v1688_v45 = vsel %vm2332_vm7, 1.0, %v3660_v16  ;;  %441 = vmatpush.msra.mxu2 %v2322_v63  ;;  %1724 = vmatpush.msk.msra.mxu0 %vm2305_vm14, %v3696_v14 }
  0x26   :  { %3852 = vst [vmem:[#allocation27_spill] sm:$0xff] %v2280_v54  ;;  %v3867_v36 = vsel %vm2354_vm13, 4294967295, %v3866_v36  ;;  %v2365_v41 = vsub.f32 %v1689_v37, %v1689_v37  ;;  %v2374_v47 = vadd.s32 16, %v2026_v1  ;;  %v362_v52 = vsub.f32 %v2322_v63, %v2350_v28  ;;  %346 = vmatpush.msra.mxu1 %v2320_v62  ;;  %1740 = vmatpush.msk.msra.mxu3 %vm2305_vm14, %v3696_v14 }
  0x27   :  { %3855 = vst [vmem:[#allocation28_spill] sm:$0xff] %v2295_v57  ;;  %v2383_v55 = vand.u32 4294901760, %v2352_v32  ;;  %v2385_v58 = vsub.f32 %v1688_v45, %v1688_v45  ;;  %v1687_v60 = vsel %vm2354_vm13, 1.0, %v3660_v16  ;;  %vm69_vm2 = vcmp.ge.s32.totalorder %v2368_v42, %v2034_v4  ;;  %444 = vmatpush.msra.mxu2 %v2352_v32  ;;  %1725 = vmatpush.msk.msra.mxu0 %vm2332_vm7, %v3696_v14 }
  0x28   :  { %3858 = vst [vmem:[#allocation29_spill] sm:$0xff] %v2318_v61  ;;  %v2395_v17 = vand.u32 4294901760, %v2365_v41  ;;  %vm87_vm6 = vcmp.lt.s32.totalorder %v2368_v42, %v2054_v11  ;;  %vm68_vm8 = vcmp.ge.s32.totalorder %v2374_v47, %v2034_v4  ;;  %v2407_v37 = vand.u32 4294901760, %v356_v0  ;;  %352 = vmatpush.msra.mxu1 %v2347_v23  ;;  %1741 = vmatpush.msk.msra.mxu3 %vm2332_vm7, %v3696_v14 }
  0x29   :  { %3859 = vst [vmem:[#allocation30_spill] sm:$0xff] %v2320_v62  ;;  %v368_v45 = vsub.f32 %v2352_v32, %v2383_v55  ;;  %vm2411_vm11 = vmand %vm69_vm2, %vm87_vm6  ;;  %v3873_v16 = vmov 0  ;;  %v2416_v50 = vand.u32 4294901760, %v2385_v58  ;;  %vm86_vm9 = vcmp.lt.s32.totalorder %v2374_v47, %v2054_v11  ;;  %447 = vmatpush.msra.mxu2 %v2365_v41  ;;  %1726 = vmatpush.msk.msra.mxu0 %vm2354_vm13, %v3696_v14 }
  0x2a   :  { %3860 = vst [vmem:[#allocation31_spill] sm:$0xff] %v2322_v63  ;;  %v3874_v16 = vsel %vm2411_vm11, 4294967295, %v3873_v16  ;;  %vm2424_vm12 = vmand %vm68_vm8, %vm86_vm9  ;;  %v3876_v0 = vmov 0  ;;  %v2428_v44 = vsub.f32 %v1687_v60, %v1687_v60  ;;  %v2431_v40 = vadd.s32 8, %v2026_v1  ;;  %358 = vmatpush.msra.mxu1 %v2407_v37  ;;  %1742 = vmatpush.msk.msra.mxu3 %vm2354_vm13, %v3696_v14 }
  0x2b   :  { %3863 = vst [vmem:[#allocation32_spill] sm:$0xff] %v2347_v23  ;;  %v3877_v0 = vsel %vm2424_vm12, 4294967295, %v3876_v0  ;;  %v3881_v35 = vmov 0.0   ;;  %v2440_v63 = vand.u32 4294901760, %v362_v52  ;;  %v374_v27 = vsub.f32 %v2365_v41, %v2395_v17  ;;  %450 = vmatpush.msra.mxu2 %v2385_v58  ;;  %1727 = vmatpush.msk.msra.mxu0 %vm2411_vm11, %v3696_v14 }
  0x2c   :  { %3864 = vst [vmem:[#allocation33_spill] sm:$0xff] %v2350_v28  ;;  %v1686_v31 = vsel %vm2411_vm11, 1.0, %v3881_v35  ;;  %v2452_v62 = vand.u32 4294901760, %v368_v45  ;;  %v2455_v52 = vand.u32 4294901760, %v2428_v44  ;;  %vm67_vm2 = vcmp.ge.s32.totalorder %v2431_v40, %v2034_v4  ;;  %1743 = vmatpush.msk.msra.mxu3 %vm2411_vm11, %v3696_v14 }
  0x2d   :  { %3865 = vst [vmem:[#allocation34_spill] sm:$0xff] %v2352_v32  ;;  %v2444_v60 = vsub.f32 %v1686_v31, %v1686_v31  ;;  %vm85_vm6 = vcmp.lt.s32.totalorder %v2431_v40, %v2054_v11  ;;  %v380_v31 = vsub.f32 %v2385_v58, %v2416_v50  ;;  %v3886_v45 = vmov 0  ;;  %364 = vmatpush.msra.mxu1 %v2440_v63 }
  0x2e   :  { %3868 = vst [vmem:[#allocation35_spill] sm:$0xff] %v2365_v41  ;;  %vm2467_vm8 = vmand %vm67_vm2, %vm85_vm6  ;;  %vm84_vm9 = vcmp.lt.s32.totalorder %v2026_v1, %v2054_v11  ;;  %v1685_v23 = vsel %vm2424_vm12, 1.0, %v3881_v35  ;;  %vm3890_vm2 = vcmp.ge.s32.totalorder %v2026_v1, %v2034_v4  ;;  %v2498_v41 = vand.u32 4294901760, %v43_v22  ;;  %453 = vmatpush.msra.mxu2 %v2428_v44  ;;  %1728 = vmatpush.msk.msra.mxu0 %vm2424_vm12, %v3696_v14 }
  0x2f   :  { %3869 = vst [vmem:[#allocation36_spill] sm:$0xff] %v2383_v55  ;;  %v3887_v45 = vsel %vm2467_vm8, 4294967295, %v3886_v45  ;;  %v2472_v32 = vand.u32 4294901760, %v2444_v60  ;;  %vm2486_vm6 = vmand %vm3890_vm2, %vm84_vm9  ;;  %v2490_v61 = vsub.f32 %v1685_v23, %v1685_v23  ;;  %v1684_v11 = vsel %vm2467_vm8, 1.0, %v3881_v35  ;;  %370 = vmatpush.msra.mxu1 %v2452_v62  ;;  %1744 = vmatpush.msk.msra.mxu3 %vm2424_vm12, %v3696_v14 }
  0x30   :  { %3870 = vst [vmem:[#allocation37_spill] sm:$0xff] %v2385_v58  ;;  %v2501_v54 = vand.u32 4294901760, %v374_v27  ;;  %v386_v4 = vsub.f32 %v2428_v44, %v2455_v52  ;;  %v2505_v51 = vsub.f32 %v1684_v11, %v1684_v11  ;;  %v1683_v23 = vsel %vm2486_vm6, 1.0, %v3881_v35  ;;  %456 = vmatpush.msra.mxu2 %v2444_v60  ;;  %1729 = vmatpush.msk.msra.mxu0 %vm2467_vm8, %v3696_v14 }
  0x31   :  { %3871 = vst [vmem:[#allocation38_spill] sm:$0xff] %v2395_v17  ;;  %v2515_v46 = vand.u32 4294901760, %v2490_v61  ;;  %v2517_v27 = vsub.f32 %v1683_v23, %v1683_v23  ;;  %v309_v11 = vsub.f32 %v43_v22, %v2498_v41  ;;  %v392_v58 = vsub.f32 %v2444_v60, %v2472_v32  ;;  %1745 = vmatpush.msk.msra.mxu3 %vm2467_vm8, %v3696_v14 }
  0x32   :  { %3872 = vst [vmem:[#allocation39_spill] sm:$0xff] %v2407_v37  ;;  %v3891_v37 = vmov 0  ;;  %v2529_v1 = vand.u32 4294901760, %v2505_v51  ;;  %376 = vmatpush.msra.mxu1 %v2501_v54  ;;  %459 = vmatpush.msra.mxu2 %v2490_v61 }
  0x33   :  { %3875 = vst [vmem:[#allocation40_spill] sm:$0xff] %v2416_v50  ;;  %v3892_v37 = vsel %vm2486_vm6, 4294967295, %v3891_v37  ;;  %v310_v22 = vand.u32 4294901760, %v309_v11  ;;  %v398_v23 = vsub.f32 %v2490_v61, %v2515_v46  ;;  %1730 = vmatpush.msk.msra.mxu0 %vm2486_vm6, %v3696_v14  ;;  %1746 = vmatpush.msk.msra.mxu3 %vm2486_vm6, %v3696_v14 }
  0x34   :  { %3878 = vst [vmem:[#allocation41_spill] sm:$0xff] %v3877_v0  ;;  %462 = vmatpush.msra.mxu2 %v2505_v51 }
  0x35   :  { %3879 = vst [vmem:[#allocation42_spill] sm:$0xff] %v2428_v44  ;;  %v311_v44 = vsub.f32 %v309_v11, %v310_v22  ;;  %514 = vmatpush.msrb.mxu0 %v2161_v29  ;;  %507 = vmatmul.f32.vlgmr.msra.gmra.mxu3 %v310_v22  ;;  %v162_v22 = vmul.u32 32, %v2038_v6 }
  0x36   :  { %3880 = vst [vmem:[#allocation43_spill] sm:$0xff] %v2431_v40  ;;  %v2566_v40 = vand.u32 4294901760, %v398_v23  ;;  %465 = vmatpush.msra.mxu2 %v2517_v27  ;;  %v194_v23 = vadd.s32 1, %v2038_v6 }
  0x37   :  { %3882 = vst [vmem:[#allocation44_spill] sm:$0xff] %v2440_v63  ;;  %v2524_v63 = vand.u32 4294901760, %v380_v31  ;;  %v2539_v31 = vand.u32 4294901760, %v386_v4  ;;  %v2554_v4 = vand.u32 4294901760, %v392_v58  ;;  %518 = vmatpush.msrb.mxu0 %v2185_v33  ;;  %468 = vmatmul.f32.vlgmr.msra.gmra.mxu2 %v309_v11  ;;  %v161_v11 = vmul.u32 32, %v2041_v7 }
  0x38   :  { %3883 = vst [vmem:[#allocation45_spill] sm:$0xff] %v2444_v60  ;;  %v312_v60 = vand.u32 4294901760, %v311_v44  ;;  %vm2604_vm2 = vcmp.ge.s32.totalorder %v2028_v2, %v162_v22  ;;  %v159_v22 = vmul.u32 32, %v2047_v9 }
  0x39   :  { %3884 = vst [vmem:[#allocation46_spill] sm:$0xff] %v2452_v62  ;;  %v2544_v62 = vand.u32 4294901760, %v2517_v27  ;;  %382 = vmatpush.msra.mxu1 %v2524_v63  ;;  %522 = vmatpush.msrb.mxu0 %v2210_v38 }
  0x3a   :  { %3885 = vst [vmem:[#allocation47_spill] sm:$0xff] %v2455_v52  ;;  %313 = vmatmul.f32.vlgmr.msra.gmra.mxu0 %v312_v60  ;;  %v195_v60 = vadd.s32 1, %v2031_v3 }
  0x3b   :  { %3888 = vst [vmem:[#allocation48_spill] sm:$0xff] %v3887_v45  ;;  %388 = vmatpush.msra.mxu1 %v2539_v31  ;;  %v410_v58 = vsub.f32 %v2517_v27, %v2544_v62  ;;  %526 = vmatpush.msrb.mxu0 %v2234_v43 }
  0x3c   :  { %3889 = vst [vmem:[#allocation49_spill] sm:$0xff] %v2472_v32  ;;  %v211_v6 = vmul.u32 32, %v195_v60 }
  0x3d   :  { %3893 = vst [vmem:[#allocation50_spill] sm:$0xff] %v2490_v61  ;;  %394 = vmatpush.msra.mxu1 %v2554_v4  ;;  %v2578_v44 = vand.u32 4294901760, %v410_v58  ;;  %530 = vmatpush.msrb.mxu0 %v2249_v48  ;;  %v193_v58 = vadd.s32 1, %v2041_v7  ;;  %v210_v7 = vmul.u32 32, %v194_v23  ;;  %v3910_v48 = vmov 1.0  }
  0x3e   :  { %3894 = vst [vmem:[#allocation51_spill] sm:$0xff] %v2501_v54  ;;  %v404_v54 = vsub.f32 %v2505_v51, %v2529_v1  ;;  %vm227_vm8 = vcmp.lt.s32.totalorder %v2028_v2, %v211_v6  ;;  %v191_v23 = vadd.s32 1, %v2047_v9  ;;  %v190_v9 = vadd.s32 1, %v2050_v10 }
  0x3f   :  { %3895 = vst [vmem:[#allocation52_spill] sm:$0xff] %v2505_v51  ;;  %400 = vmatpush.msra.mxu1 %v2566_v40  ;;  %v192_v51 = vadd.s32 1, %v2044_v8  ;;  %534 = vmatpush.msrb.mxu0 %v2272_v53  ;;  %vm226_vm12 = vcmp.lt.s32.totalorder %v2028_v2, %v210_v7  ;;  %v157_v7 = vmul.u32 32, %v2059_v12  ;;  %v3937_v6 = vmov 0 }
  0x40   :  { %3896 = vst [vmem:[#allocation53_spill] sm:$0xff] %v2515_v46  ;;  %v2573_v61 = vand.u32 4294901760, %v404_v54  ;;  %v163_v54 = vmul.u32 32, %v2031_v3  ;;  %v3919_v3 = vmov 0 }
  0x41   :  { %3897 = vst [vmem:[#allocation54_spill] sm:$0xff] %v2517_v27  ;;  %v160_v27 = vmul.u32 32, %v2044_v8  ;;  %v208_v60 = vmul.u32 32, %v192_v51  ;;  %538 = vmatpush.msrb.mxu0 %v2295_v57  ;;  %v3929_v8 = vmov 0 }
  0x42   :  { %3898 = vst [vmem:[#allocation55_spill] sm:$0xff] %v2524_v63  ;;  %406 = vmatpush.msra.mxu1 %v2573_v61  ;;  %vm2599_vm9 = vcmp.ge.s32.totalorder %v2028_v2, %v163_v54  ;;  %v209_v54 = vmul.u32 32, %v193_v58  ;;  %v154_v63 = vmul.u32 32, %v2109_v20 }
  0x43   :  { %3899 = vst [vmem:[#allocation56_spill] sm:$0xff] %v2529_v1  ;;  %vm2617_vm6 = vcmp.ge.s32.totalorder %v2028_v2, %v160_v27  ;;  %v3915_v27 = vmov 0  ;;  %vm2637_vm13 = vcmp.lt.s32.totalorder %v2028_v2, %v208_v60  ;;  %542 = vmatpush.msrb.mxu0 %v2350_v28  ;;  %v3924_v60 = vmov 0 }
  0x44   :  { %3900 = vst [vmem:[#allocation57_spill] sm:$0xff] %v2539_v31  ;;  %412 = vmatpush.msra.mxu1 %v2578_v44  ;;  %vm225_vm11 = vcmp.lt.s32.totalorder %v2028_v2, %v209_v54 }
  0x45   :  { %3901 = vst [vmem:[#allocation58_spill] sm:$0xff] %v2544_v62  ;;  %414 = vmatmul.f32.vlgmr.msra.gmra.mxu1 %v2498_v41  ;;  %546 = vmatpush.msrb.mxu0 %v2383_v55 }
  0x46   :  { %3902 = vst [vmem:[#allocation59_spill] sm:$0xff] %v2554_v4  ;;  %1747 = vmatpush.msk.msrb.mxu1 %vm2077_vm10, %v3696_v14  ;;  %vm2612_vm10 = vcmp.ge.s32.totalorder %v2028_v2, %v161_v11  ;;  %v158_v11 = vmul.u32 32, %v2050_v10  ;;  %v207_v10 = vmul.u32 32, %v191_v23  ;;  %v206_v23 = vmul.u32 32, %v190_v9 }
  0x47   :  { %3903 = vst [vmem:[#allocation60_spill] sm:$0xff] %v2566_v40  ;;  %550 = vmatpush.msrb.mxu0 %v2395_v17  ;;  %v155_v40 = vmul.u32 32, %v2106_v19 }
  0x48   :  { %3904 = vst [vmem:[#allocation61_spill] sm:$0xff] %v2573_v61  ;;  %1748 = vmatpush.msk.msrb.mxu1 %vm2095_vm15, %v3910_v48  ;;  %vm2631_vm15 = vmand %vm2599_vm9, %vm227_vm8  ;;  %vm2657_vm9 = vcmp.ge.s32.totalorder %v2028_v2, %v159_v22  ;;  %v188_v61 = vadd.s32 1, %v2103_v18 }
  0x49   :  { %3905 = vst [vmem:[#allocation62_spill] sm:$0xff] %v2578_v44  ;;  %v3916_v27 = vsel %vm2631_vm15, 4294967295, %v3915_v27  ;;  %v1714_v58 = vsel %vm2631_vm15, 1.0, %v3881_v35  ;;  %vm2649_vm8 = vmand %vm2604_vm2, %vm226_vm12  ;;  %1763 = vmatpush.msk.msrb.mxu2 %vm2631_vm15, %v3910_v48  ;;  %vm2677_vm2 = vcmp.ge.s32.totalorder %v2028_v2, %v158_v11  ;;  %554 = vmatpush.msrb.mxu0 %v2416_v50 }
  0x4a   :  { %1749 = vmatpush.msk.msrb.mxu1 %vm2120_vm0, %v3910_v48  ;;  %v3920_v3 = vsel %vm2649_vm8, 4294967295, %v3919_v3  ;;  %v2665_v14 = vsub.f32 %v1714_v58, %v1714_v58  ;;  %v1713_v54 = vsel %vm2649_vm8, 1.0, %v3881_v35  ;;  %vm2672_vm12 = vmand %vm2612_vm10, %vm225_vm11  ;;  %vm223_vm11 = vcmp.lt.s32.totalorder %v2028_v2, %v207_v10 }
  0x4b   :  { %v3925_v60 = vsel %vm2672_vm12, 4294967295, %v3924_v60  ;;  %v2682_v58 = vsub.f32 %v1713_v54, %v1713_v54  ;;  %v1712_v28 = vsel %vm2672_vm12, 1.0, %v3881_v35  ;;  %vm2691_vm10 = vmand %vm2617_vm6, %vm2637_vm13  ;;  %1764 = vmatpush.msk.msrb.mxu2 %vm2649_vm8, %v3910_v48  ;;  %v3934_v10 = vmov 0  ;;  %558 = vmatpush.msrb.mxu0 %v2455_v52 }
  0x4c   :  { %1750 = vmatpush.msk.msrb.mxu1 %vm2144_vm1, %v3910_v48  ;;  %3923 = vst [vmem:[#allocation63_spill] sm:$0xff] %v2665_v14  ;;  %v3930_v8 = vsel %vm2691_vm10, 4294967295, %v3929_v8  ;;  %vm2700_vm1 = vcmp.ge.s32.totalorder %v2028_v2, %v157_v7  ;;  %v2708_v53 = vand.u32 4294901760, %v2665_v14  ;;  %v2710_v51 = vsub.f32 %v1712_v28, %v1712_v28  ;;  %vm2717_vm13 = vmand %vm2657_vm9, %vm223_vm11 }
  0x4d   :  { %3928 = vst [vmem:[#allocation64_spill] sm:$0xff] %v2682_v58  ;;  %v1711_v9 = vsel %vm2691_vm10, 1.0, %v3881_v35  ;;  %v3935_v10 = vsel %vm2717_vm13, 4294967295, %v3934_v10  ;;  %vm222_vm6 = vcmp.lt.s32.totalorder %v2028_v2, %v206_v23  ;;  %v2724_v7 = vand.u32 4294901760, %v2682_v58  ;;  %1765 = vmatpush.msk.msrb.mxu2 %vm2672_vm12, %v3910_v48  ;;  %562 = vmatpush.msrb.mxu0 %v2472_v32 }
  0x4e   :  { %1751 = vmatpush.msk.msrb.mxu1 %vm2169_vm3, %v3910_v48  ;;  %3933 = vst [vmem:[#allocation65_spill] sm:$0xff] %v2710_v51  ;;  %v2726_v54 = vsub.f32 %v1711_v9, %v1711_v9  ;;  %v1710_v28 = vsel %vm2717_vm13, 1.0, %v3881_v35  ;;  %vm2733_vm3 = vmand %vm2677_vm2, %vm222_vm6  ;;  %v189_v23 = vadd.s32 1, %v2059_v12  ;;  %v662_v9 = vsub.f32 %v2665_v14, %v2708_v53 }
  0x4f   :  { %v3938_v6 = vsel %vm2733_vm3, 4294967295, %v3937_v6  ;;  %v2747_v17 = vand.u32 4294901760, %v2710_v51  ;;  %v2749_v22 = vsub.f32 %v1710_v28, %v1710_v28  ;;  %v1709_v55 = vsel %vm2733_vm3, 1.0, %v3881_v35  ;;  %1766 = vmatpush.msk.msrb.mxu2 %vm2691_vm10, %v3910_v48  ;;  %566 = vmatpush.msrb.mxu0 %v2515_v46 }
  0x50   :  { %3936 = vst [vmem:[#allocation66_spill] sm:$0xff] %v2726_v54  ;;  %1752 = vmatpush.msk.msrb.mxu1 %vm2193_vm4, %v3910_v48  ;;  %v668_v12 = vsub.f32 %v2682_v58, %v2724_v7  ;;  %v2758_v57 = vand.u32 4294901760, %v2726_v54  ;;  %v2760_v43 = vsub.f32 %v1709_v55, %v1709_v55  ;;  %v205_v38 = vmul.u32 32, %v189_v23 }
  0x51   :  { %3939 = vst [vmem:[#allocation67_spill] sm:$0xff] %v2749_v22  ;;  %v2768_v28 = vand.u32 4294901760, %v662_v9  ;;  %v674_v50 = vsub.f32 %v2710_v51, %v2747_v17  ;;  %v2773_v33 = vand.u32 4294901760, %v2749_v22  ;;  %v156_v55 = vmul.u32 32, %v2103_v18  ;;  %1767 = vmatpush.msk.msrb.mxu2 %vm2717_vm13, %v3910_v48  ;;  %570 = vmatpush.msrb.mxu0 %v2529_v1 }
  0x52   :  { %3940 = vst [vmem:[#allocation68_spill] sm:$0xff] %v2760_v43  ;;  %1753 = vmatpush.msk.msrb.mxu1 %vm2218_vm5, %v3910_v48  ;;  %v2777_v23 = vand.u32 4294901760, %v668_v12  ;;  %v680_v29 = vsub.f32 %v2726_v54, %v2758_v57  ;;  %v2782_v44 = vand.u32 4294901760, %v2760_v43  ;;  %vm221_vm9 = vcmp.lt.s32.totalorder %v2028_v2, %v205_v38 }
  0x53   :  { %3941 = vst [vmem:[#allocation69_spill] sm:$0xff] %v2768_v28  ;;  %vm3943_vm2 = vnez %v3848_v49  ;;  %664 = vmatpush.msrb.mxu3 %v2768_v28  ;;  %v2792_v9 = vand.u32 4294901760, %v674_v50  ;;  %v686_v12 = vsub.f32 %v2749_v22, %v2773_v33  ;;  %vm2798_vm11 = vmand %vm2700_vm1, %vm221_vm9  ;;  %v3945_v52 = vmov 0  ;;  %1768 = vmatpush.msk.msrb.mxu2 %vm2733_vm3, %v3910_v48 }
  0x54   :  { %3942 = vst [vmem:[#allocation70_spill] sm:$0xff] %v2777_v23  ;;  %1754 = vmatpush.msk.msrb.mxu1 %vm3943_vm2, %v3910_v48  ;;  %v3946_v52 = vsel %vm2798_vm11, 4294967295, %v3945_v52  ;;  %vm2803_vm6 = vcmp.ge.s32.totalorder %v2028_v2, %v156_v55  ;;  %v2809_v50 = vand.u32 4294901760, %v680_v29  ;;  %v692_v28 = vsub.f32 %v2760_v43, %v2782_v44  ;;  %574 = vmatpush.msrb.mxu0 %v2544_v62 }
  0x55   :  { %3944 = vst [vmem:[#allocation71_spill] sm:$0xff] %v2792_v9  ;;  %v1708_v11 = vsel %vm2798_vm11, 1.0, %v3881_v35  ;;  %vm3950_vm1 = vnez %v3854_v56  ;;  %670 = vmatpush.msrb.mxu3 %v2777_v23  ;;  %v2824_v18 = vand.u32 4294901760, %v686_v12  ;;  %v204_v55 = vmul.u32 32, %v188_v61  ;;  %1769 = vmatpush.msk.msrb.mxu2 %vm2798_vm11, %v3910_v48 }
  0x56   :  { %3949 = vst [vmem:[#allocation72_spill] sm:$0xff] %v2809_v50  ;;  %1755 = vmatpush.msk.msrb.mxu1 %vm3950_vm1, %v3910_v48  ;;  %v2826_v29 = vsub.f32 %v1708_v11, %v1708_v11  ;;  %v187_v32 = vadd.s32 1, %v2106_v19  ;;  %v2830_v4 = vand.u32 4294901760, %v692_v28  ;;  %vm2833_vm9 = vcmp.ge.s32.totalorder %v2028_v2, %v155_v40  ;;  %576 = vmatmul.f32.vlgmr.msrb.gmra.mxu0 %v2498_v41 }
  0x57   :  { %3951 = vst [vmem:[#allocation73_spill] sm:$0xff] %v2824_v18  ;;  %v186_v23 = vadd.s32 1, %v2109_v20  ;;  %676 = vmatpush.msrb.mxu3 %v2792_v9  ;;  %vm220_vm1 = vcmp.lt.s32.totalorder %v2028_v2, %v204_v55  ;;  %v153_v61 = vmul.u32 32, %v2130_v24  ;;  %v3956_v20 = vmov 0  ;;  %762 = vmatpush.msra.mxu0 %v2665_v14 }
  0x58   :  { %3952 = vst [vmem:[#allocation74_spill] sm:$0xff] %v2826_v29  ;;  %1756 = vmatpush.msk.msrb.mxu1 %vm2305_vm14, %v3910_v48  ;;  %v2847_v19 = vand.u32 4294901760, %v2826_v29  ;;  %v203_v40 = vmul.u32 32, %v187_v32  ;;  %vm2854_vm2 = vmand %vm2803_vm6, %vm220_vm1  ;;  %vm2859_vm14 = vcmp.ge.s32.totalorder %v2028_v2, %v154_v63  ;;  %v185_v11 = vadd.s32 1, %v2130_v24 }
  0x59   :  { %3953 = vst [vmem:[#allocation75_spill] sm:$0xff] %v2830_v4  ;;  %v3957_v20 = vsel %vm2854_vm2, 4294967295, %v3956_v20  ;;  %v202_v12 = vmul.u32 32, %v186_v23  ;;  %v152_v32 = vmul.u32 32, %v2133_v25  ;;  %682 = vmatpush.msrb.mxu3 %v2809_v50  ;;  %v1707_v63 = vsel %vm2854_vm2, 1.0, %v3881_v35  ;;  %1770 = vmatpush.msk.msrb.mxu2 %vm2854_vm2, %v3910_v48 }
  0x5a   :  { %1757 = vmatpush.msk.msrb.mxu1 %vm2332_vm7, %v3910_v48  ;;  %v698_v38 = vsub.f32 %v2826_v29, %v2847_v19  ;;  %vm219_vm6 = vcmp.lt.s32.totalorder %v2028_v2, %v203_v40  ;;  %vm2876_vm1 = vcmp.ge.s32.totalorder %v2028_v2, %v153_v61  ;;  %v2881_v23 = vsub.f32 %v1707_v63, %v1707_v63 }
  0x5b   :  { %vm2885_vm7 = vmand %vm2833_vm9, %vm219_vm6  ;;  %v3963_v55 = vmov 0  ;;  %vm218_vm5 = vcmp.lt.s32.totalorder %v2028_v2, %v202_v12  ;;  %v201_v50 = vmul.u32 32, %v185_v11  ;;  %vm2894_vm4 = vcmp.ge.s32.totalorder %v2028_v2, %v152_v32  ;;  %688 = vmatpush.msrb.mxu3 %v2824_v18  ;;  %765 = vmatpush.msra.mxu0 %v2682_v58 }
  0x5c   :  { %3962 = vst [vmem:[#allocation76_spill] sm:$0xff] %v2881_v23  ;;  %v3964_v55 = vsel %vm2885_vm7, 4294967295, %v3963_v55  ;;  %vm3967_vm0 = vnez %v3867_v36  ;;  %v2902_v31 = vand.u32 4294901760, %v698_v38  ;;  %v1706_v61 = vsel %vm2885_vm7, 1.0, %v3881_v35  ;;  %vm2909_vm9 = vmand %vm2859_vm14, %vm218_vm5  ;;  %1771 = vmatpush.msk.msrb.mxu2 %vm2885_vm7, %v3910_v48 }
  0x5d   :  { %1758 = vmatpush.msk.msrb.mxu1 %vm3967_vm0, %v3910_v48  ;;  %v3969_v12 = vmov 0  ;;  %v184_v11 = vadd.s32 1, %v2133_v25  ;;  %v151_v32 = vmul.u32 32, %v2368_v42  ;;  %v2917_v63 = vand.u32 4294901760, %v2881_v23  ;;  %694 = vmatpush.msrb.mxu3 %v2830_v4 }
  0x5e   :  { %3968 = vst [vmem:[#allocation77_spill] sm:$0xff] %v2902_v31  ;;  %v3970_v12 = vsel %vm2909_vm9, 4294967295, %v3969_v12  ;;  %v2919_v38 = vsub.f32 %v1706_v61, %v1706_v61  ;;  %v1705_v62 = vsel %vm2909_vm9, 1.0, %v3881_v35  ;;  %vm217_vm5 = vcmp.lt.s32.totalorder %v2028_v2, %v201_v50  ;;  %1772 = vmatpush.msk.msrb.mxu2 %vm2909_vm9, %v3910_v48  ;;  %768 = vmatpush.msra.mxu0 %v2710_v51 }
  0x5f   :  { %vm3972_vm14 = vnez %v3874_v16  ;;  %v2931_v25 = vsub.f32 %v1705_v62, %v1705_v62  ;;  %vm2935_vm6 = vmand %vm2876_vm1, %vm217_vm5  ;;  %v3974_v28 = vmov 0  ;;  %v200_v61 = vmul.u32 32, %v184_v11  ;;  %700 = vmatpush.msrb.mxu3 %v2902_v31 }
  0x60   :  { %3971 = vst [vmem:[#allocation78_spill] sm:$0xff] %v2919_v38  ;;  %1759 = vmatpush.msk.msrb.mxu1 %vm3972_vm14, %v3910_v48  ;;  %v3975_v28 = vsel %vm2935_vm6, 4294967295, %v3974_v28  ;;  %vm2940_vm0 = vcmp.ge.s32.totalorder %v2028_v2, %v151_v32  ;;  %v183_v18 = vadd.s32 1, %v2368_v42  ;;  %v704_v62 = vsub.f32 %v2881_v23, %v2917_v63  ;;  %1773 = vmatpush.msk.msrb.mxu2 %vm2935_vm6, %v3910_v48 }
  0x61   :  { %3973 = vst [vmem:[#allocation79_spill] sm:$0xff] %v2931_v25  ;;  %v2950_v24 = vand.u32 4294901760, %v2919_v38  ;;  %v1704_v11 = vsel %vm2935_vm6, 1.0, %v3881_v35  ;;  %v150_v42 = vmul.u32 32, %v2374_v47  ;;  %vm3979_vm1 = vnez %v3877_v0  ;;  %771 = vmatpush.msra.mxu0 %v2726_v54 }
  0x62   :  { %1760 = vmatpush.msk.msrb.mxu1 %vm3979_vm1, %v3910_v48  ;;  %v2963_v32 = vand.u32 4294901760, %v2931_v25  ;;  %v2965_v14 = vsub.f32 %v1704_v11, %v1704_v11  ;;  %vm216_vm5 = vcmp.lt.s32.totalorder %v2028_v2, %v200_v61  ;;  %v199_v4 = vmul.u32 32, %v183_v18 }
  0x63   :  { %3978 = vst [vmem:[#allocation80_spill] sm:$0xff] %v2950_v24  ;;  %v2970_v9 = vand.u32 4294901760, %v704_v62  ;;  %v710_v1 = vsub.f32 %v2919_v38, %v2950_v24  ;;  %vm2976_vm1 = vmand %vm2894_vm4, %vm216_vm5  ;;  %v3983_v46 = vmov 0  ;;  %vm2981_vm14 = vcmp.ge.s32.totalorder %v2028_v2, %v150_v42  ;;  %774 = vmatpush.msra.mxu0 %v2749_v22 }
  0x64   :  { %3980 = vst [vmem:[#allocation81_spill] sm:$0xff] %v2963_v32  ;;  %v3984_v46 = vsel %vm2976_vm1, 4294967295, %v3983_v46  ;;  %v182_v18 = vadd.s32 1, %v2374_v47  ;;  %vm3987_vm9 = vnez %v3887_v45  ;;  %v716_v40 = vsub.f32 %v2931_v25, %v2963_v32  ;;  %v3992_v45 = vld [vmem:[#allocation43_spill] sm:$0xff]  ;;  %1774 = vmatpush.msk.msrb.mxu2 %vm2976_vm1, %v3910_v48 }
  0x65   :  { %3981 = vst [vmem:[#allocation82_spill] sm:$0xff] %v2965_v14  ;;  %1761 = vmatpush.msk.msrb.mxu1 %vm3987_vm9, %v3910_v48  ;;  %v2995_v61 = vand.u32 4294901760, %v2965_v14  ;;  %v1703_v62 = vsel %vm2976_vm1, 1.0, %v3881_v35  ;;  %vm215_vm4 = vcmp.lt.s32.totalorder %v2028_v2, %v199_v4  ;;  %706 = vmatpush.msrb.mxu3 %v2970_v9  ;;  %v3003_v47 = vand.u32 4294901760, %v710_v1 }
  0x66   :  { %3982 = vst [vmem:[#allocation83_spill] sm:$0xff] %v2970_v9  ;;  %v3005_v42 = vsub.f32 %v1703_v62, %v1703_v62  ;;  %vm3009_vm5 = vmand %vm2940_vm0, %vm215_vm4  ;;  %v3990_v58 = vmov 0  ;;  %v198_v31 = vmul.u32 32, %v182_v18  ;;  %v149_v0 = vmul.u32 32, %v3992_v45  ;;  %777 = vmatpush.msra.mxu0 %v2760_v43 }
  0x67   :  { %3988 = vst [vmem:[#allocation84_spill] sm:$0xff] %v2995_v61  ;;  %v3991_v58 = vsel %vm3009_vm5, 4294967295, %v3990_v58  ;;  %vm3993_vm9 = vnez %v3892_v37  ;;  %v3020_v1 = vand.u32 4294901760, %v716_v40  ;;  %v722_v4 = vsub.f32 %v2965_v14, %v2995_v61  ;;  %712 = vmatpush.msrb.mxu3 %v3003_v47  ;;  %1775 = vmatpush.msk.msrb.mxu2 %vm3009_vm5, %v3910_v48 }
  0x68   :  { %3989 = vst [vmem:[#allocation85_spill] sm:$0xff] %v3005_v42  ;;  %1762 = vmatpush.msk.msrb.mxu1 %vm3993_vm9, %v3910_v48  ;;  %v1702_v50 = vsel %vm3009_vm5, 1.0, %v3881_v35  ;;  %v181_v18 = vadd.s32 1, %v3992_v45  ;;  %v3032_v62 = vand.u32 4294901760, %v3005_v42  ;;  %vm214_vm0 = vcmp.lt.s32.totalorder %v2028_v2, %v198_v31  ;;  %780 = vmatpush.msra.mxu0 %v2826_v29 }
  0x69   :  { %3994 = vst [vmem:[#allocation43_spill] sm:$0xff] %v3020_v1  ;;  %613 = vmatmul.f32.vlgmr.msrb.gmra.mxu1 %v2498_v41  ;;  %v3034_v40 = vsub.f32 %v1702_v50, %v1702_v50  ;;  %vm3038_vm4 = vcmp.ge.s32.totalorder %v2028_v2, %v149_v0  ;;  %v3042_v9 = vand.u32 4294901760, %v722_v4  ;;  %vm3046_vm9 = vmand %vm2981_vm14, %vm214_vm0  ;;  %v3999_v41 = vmov 0  ;;  %v4001_v50 = vld [vmem:[#allocation11_spill] sm:$0xff]  ;;  %718 = vmatpush.msrb.mxu3 %v3020_v1 }
  0x6a   :  { %3995 = vst [vmem:[#allocation86_spill] sm:$0xff] %v3032_v62  ;;  %v4000_v41 = vsel %vm3046_vm9, 4294967295, %v3999_v41  ;;  %1779 = vmatpush.msk.msra.mxu1 %vm2631_vm15, %v3910_v48  ;;  %v197_v45 = vmul.u32 32, %v181_v18  ;;  %v148_v31 = vmul.u32 32, %v4001_v50  ;;  %v180_v0 = vadd.s32 1, %v4001_v50  ;;  %1776 = vmatpush.msk.msrb.mxu2 %vm3046_vm9, %v3910_v48 }
  0x6b   :  { %3996 = vst [vmem:[#allocation87_spill] sm:$0xff] %v3034_v40  ;;  %v728_v11 = vsub.f32 %v3005_v42, %v3032_v62  ;;  %v3062_v4 = vand.u32 4294901760, %v3034_v40  ;;  %v1701_v18 = vsel %vm3046_vm9, 1.0, %v3881_v35  ;;  %724 = vmatpush.msrb.mxu3 %v3042_v9  ;;  %v4006_v22 = vmov 0  ;;  %783 = vmatpush.msra.mxu0 %v2881_v23 }
  0x6c   :  { %v3068_v54 = vsub.f32 %v1701_v18, %v1701_v18  ;;  %vm213_vm14 = vcmp.lt.s32.totalorder %v2028_v2, %v197_v45  ;;  %1780 = vmatpush.msk.msra.mxu1 %vm2649_vm8, %v3910_v48  ;;  %vm3075_vm0 = vcmp.ge.s32.totalorder %v2028_v2, %v148_v31  ;;  %v196_v1 = vmul.u32 32, %v180_v0 }
  0x6d   :  { %4002 = vst [vmem:[#allocation11_spill] sm:$0xff] %v3062_v4  ;;  %v3083_v18 = vand.u32 4294901760, %v728_v11  ;;  %v734_v45 = vsub.f32 %v3034_v40, %v3062_v4  ;;  %vm3089_vm5 = vmand %vm3038_vm4, %vm213_vm14  ;;  %v4010_v43 = vmov 0  ;;  %786 = vmatpush.msra.mxu0 %v2919_v38  ;;  %vm4016_vm14 = vnez %v3991_v58 }
  0x6e   :  { %4003 = vst [vmem:[#allocation88_spill] sm:$0xff] %v3068_v54  ;;  %v4007_v22 = vsel %vm3089_vm5, 4294967295, %v4006_v22  ;;  %v3095_v31 = vand.u32 4294901760, %v3068_v54  ;;  %v1700_v0 = vsel %vm3089_vm5, 1.0, %v3881_v35  ;;  %vm212_vm9 = vcmp.lt.s32.totalorder %v2028_v2, %v196_v1  ;;  %1781 = vmatpush.msk.msra.mxu1 %vm2672_vm12, %v3910_v48  ;;  %1777 = vmatpush.msk.msrb.mxu2 %vm3089_vm5, %v3910_v48 }
  0x6f   :  { %730 = vmatpush.msrb.mxu3 %v3083_v18  ;;  %v3108_v51 = vand.u32 4294901760, %v734_v45  ;;  %v3110_v11 = vsub.f32 %v1700_v0, %v1700_v0  ;;  %vm3114_vm4 = vmand %vm3075_vm0, %vm212_vm9  ;;  %789 = vmatpush.msra.mxu0 %v2931_v25  ;;  %vm4015_vm9 = vnez %v3970_v12  ;;  %vm4017_vm0 = vnez %v4000_v41 }
  0x70   :  { %4008 = vst [vmem:[#allocation89_spill] sm:$0xff] %v3095_v31  ;;  %v4011_v43 = vsel %vm3114_vm4, 4294967295, %v4010_v43  ;;  %v740_v2 = vsub.f32 %v3068_v54, %v3095_v31  ;;  %v1699_v1 = vsel %vm3114_vm4, 1.0, %v3881_v35  ;;  %1782 = vmatpush.msk.msra.mxu1 %vm2691_vm10, %v3910_v48  ;;  %1778 = vmatpush.msk.msrb.mxu2 %vm3114_vm4, %v3910_v48 }
  0x71   :  { %4009 = vst [vmem:[#allocation90_spill] sm:$0xff] %v3110_v11  ;;  %736 = vmatpush.msrb.mxu3 %v3108_v51  ;;  %v3132_v50 = vand.u32 4294901760, %v3110_v11  ;;  %v3134_v45 = vsub.f32 %v1699_v1, %v1699_v1  ;;  %792 = vmatpush.msra.mxu0 %v2965_v14 }
  0x72   :  { %v3137_v0 = vand.u32 4294901760, %v740_v2  ;;  %1783 = vmatpush.msk.msra.mxu1 %vm2717_vm13, %v3910_v48  ;;  %856 = vmatpush.msra.mxu2 %v2708_v53 }
  0x73   :  { %4012 = vst [vmem:[#allocation91_spill] sm:$0xff] %v3132_v50  ;;  %v746_v35 = vsub.f32 %v3110_v11, %v3132_v50  ;;  %v3146_v29 = vand.u32 4294901760, %v3134_v45  ;;  %795 = vmatpush.msra.mxu0 %v3005_v42 }
  0x74   :  { %4013 = vst [vmem:[#allocation92_spill] sm:$0xff] %v3134_v45  ;;  %742 = vmatpush.msrb.mxu3 %v3137_v0  ;;  %1784 = vmatpush.msk.msra.mxu1 %vm2733_vm3, %v3910_v48 }
  0x75   :  { %4014 = vst [vmem:[#allocation93_spill] sm:$0xff] %v3146_v29  ;;  %v3153_v2 = vand.u32 4294901760, %v746_v35  ;;  %v752_v1 = vsub.f32 %v3134_v45, %v3146_v29  ;;  %860 = vmatpush.msra.mxu2 %v2724_v7  ;;  %798 = vmatpush.msra.mxu0 %v3034_v40  ;;  %v4020_v35 = vld [vmem:[#allocation22_spill] sm:$0xff] }
  0x76   :  { %1785 = vmatpush.msk.msra.mxu1 %vm2798_vm11, %v3910_v48 }
  0x77   :  { %748 = vmatpush.msrb.mxu3 %v3153_v2  ;;  %v3163_v38 = vand.u32 4294901760, %v752_v1  ;;  %864 = vmatpush.msra.mxu2 %v2747_v17  ;;  %v4022_v1 = vld [vmem:[#allocation25_spill] sm:$0xff] }
  0x78   :  { %1786 = vmatpush.msk.msra.mxu1 %vm2854_vm2, %v3910_v48  ;;  %801 = vmatpush.msra.mxu0 %v3068_v54  ;;  %v4051_v54 = vld [vmem:[#allocation62_spill] sm:$0xff] }
  0x79   :  { %754 = vmatpush.msrb.mxu3 %v3163_v38  ;;  %868 = vmatpush.msra.mxu2 %v2758_v57 }
  0x7a   :  { %1787 = vmatpush.msk.msra.mxu1 %vm2885_vm7, %v3910_v48  ;;  %804 = vmatpush.msra.mxu0 %v3110_v11  ;;  %v4045_v11 = vld [vmem:[#allocation59_spill] sm:$0xff] }
  0x7b   :  { %1795 = vmatpush.msk.msra.mxu3 %vm2631_vm15, %v3910_v48  ;;  %872 = vmatpush.msra.mxu2 %v2773_v33  ;;  %vm4049_vm15 = vnez %v3892_v37  ;;  %v4091_v37 = vld [vmem:[#allocation75_spill] sm:$0xff] }
  0x7c   :  { %1788 = vmatpush.msk.msra.mxu1 %vm4015_vm9, %v3910_v48  ;;  %807 = vmatpush.msra.mxu0 %v3134_v45  ;;  %v4032_v45 = vld [vmem:[#allocation39_spill] sm:$0xff] }
  0x7d   :  { %1796 = vmatpush.msk.msra.mxu3 %vm2649_vm8, %v3910_v48  ;;  %876 = vmatpush.msra.mxu2 %v2782_v44 }
  0x7e   :  { %1789 = vmatpush.msk.msra.mxu1 %vm2935_vm6, %v3910_v48 }
  0x7f   :  { %1797 = vmatpush.msk.msra.mxu3 %vm2672_vm12, %v3910_v48  ;;  %880 = vmatpush.msra.mxu2 %v2847_v19 }
  0x80   :  { %1790 = vmatpush.msk.msra.mxu1 %vm2976_vm1, %v3910_v48 }
  0x81   :  { %1798 = vmatpush.msk.msra.mxu3 %vm2691_vm10, %v3910_v48  ;;  %884 = vmatpush.msra.mxu2 %v2917_v63  ;;  %vm4037_vm10 = vnez %v3862_v5  ;;  %v4074_v5 = vld [vmem:[#allocation47_spill] sm:$0xff] }
  0x82   :  { %1791 = vmatpush.msk.msra.mxu1 %vm4016_vm14, %v3910_v48 }
  0x83   :  { %1799 = vmatpush.msk.msra.mxu3 %vm2717_vm13, %v3910_v48  ;;  %888 = vmatpush.msra.mxu2 %v2950_v24  ;;  %vm4018_vm13 = vnez %v3822_v13  ;;  %v4055_v13 = vld [vmem:[#allocation18_spill] sm:$0xff] }
  0x84   :  { %1792 = vmatpush.msk.msra.mxu1 %vm4017_vm0, %v3910_v48  ;;  %1811 = vmatpush.msk.msrb.mxu0 %vm4018_vm13, %v3910_v48 }
  0x85   :  { %1800 = vmatpush.msk.msra.mxu3 %vm2733_vm3, %v3910_v48  ;;  %892 = vmatpush.msra.mxu2 %v2963_v32  ;;  %vm4019_vm3 = vnez %v3824_v15  ;;  %v4057_v15 = vld [vmem:[#allocation20_spill] sm:$0xff] }
  0x86   :  { %1793 = vmatpush.msk.msra.mxu1 %vm3089_vm5, %v3910_v48  ;;  %1812 = vmatpush.msk.msrb.mxu0 %vm4019_vm3, %v3910_v48 }
  0x87   :  { %1801 = vmatpush.msk.msra.mxu3 %vm2798_vm11, %v3910_v48  ;;  %896 = vmatpush.msra.mxu2 %v2995_v61  ;;  %vm4021_vm11 = vnez %v3826_v21  ;;  %v4059_v21 = vld [vmem:[#allocation23_spill] sm:$0xff] }
  0x88   :  { %1794 = vmatpush.msk.msra.mxu1 %vm3114_vm4, %v3910_v48  ;;  %1813 = vmatpush.msk.msrb.mxu0 %vm4021_vm11, %v3910_v48 }
  0x89   :  { %1802 = vmatpush.msk.msra.mxu3 %vm2854_vm2, %v3910_v48  ;;  %900 = vmatpush.msra.mxu2 %v3032_v62  ;;  %vm4023_vm2 = vnez %v3829_v26  ;;  %v4061_v26 = vld [vmem:[#allocation19_spill] sm:$0xff] }
  0x8a   :  { %1007 = vmatpush.msrb.mxu1 %v4020_v35  ;;  %1814 = vmatpush.msk.msrb.mxu0 %vm4023_vm2, %v3910_v48  ;;  %v4024_v35 = vld [vmem:[#allocation27_spill] sm:$0xff] }
  0x8b   :  { %1803 = vmatpush.msk.msra.mxu3 %vm2885_vm7, %v3910_v48  ;;  %904 = vmatpush.msra.mxu2 %v3062_v4  ;;  %vm4025_vm7 = vnez %v3833_v30  ;;  %v4062_v30 = vld [vmem:[#allocation26_spill] sm:$0xff] }
  0x8c   :  { %1013 = vmatpush.msrb.mxu1 %v4022_v1  ;;  %1815 = vmatpush.msk.msrb.mxu0 %vm4025_vm7, %v3910_v48  ;;  %v4026_v1 = vld [vmem:[#allocation29_spill] sm:$0xff] }
  0x8d   :  { %1804 = vmatpush.msk.msra.mxu3 %vm4015_vm9, %v3910_v48  ;;  %908 = vmatpush.msra.mxu2 %v3095_v31  ;;  %vm4027_vm9 = vnez %v3837_v34  ;;  %v4064_v34 = vld [vmem:[#allocation28_spill] sm:$0xff] }
  0x8e   :  { %1019 = vmatpush.msrb.mxu1 %v4024_v35  ;;  %1816 = vmatpush.msk.msrb.mxu0 %vm4027_vm9, %v3910_v48  ;;  %v4028_v35 = vld [vmem:[#allocation30_spill] sm:$0xff] }
  0x8f   :  { %1805 = vmatpush.msk.msra.mxu3 %vm2935_vm6, %v3910_v48  ;;  %912 = vmatpush.msra.mxu2 %v3132_v50  ;;  %vm4029_vm6 = vnez %v3841_v39  ;;  %v4048_v50 = vld [vmem:[#allocation60_spill] sm:$0xff]  ;;  %v4066_v39 = vld [vmem:[#allocation33_spill] sm:$0xff] }
  0x90   :  { %1025 = vmatpush.msrb.mxu1 %v4026_v1  ;;  %1817 = vmatpush.msk.msrb.mxu0 %vm4029_vm6, %v3910_v48  ;;  %v4030_v1 = vld [vmem:[#allocation32_spill] sm:$0xff] }
  0x91   :  { %1806 = vmatpush.msk.msra.mxu3 %vm2976_vm1, %v3910_v48  ;;  %916 = vmatpush.msra.mxu2 %v3146_v29  ;;  %vm4031_vm1 = vnez %v3848_v49  ;;  %v4042_v29 = vld [vmem:[#allocation57_spill] sm:$0xff]  ;;  %v4068_v49 = vld [vmem:[#allocation36_spill] sm:$0xff] }
  0x92   :  { %1031 = vmatpush.msrb.mxu1 %v4028_v35  ;;  %1818 = vmatpush.msk.msrb.mxu0 %vm4031_vm1, %v3910_v48  ;;  %v4034_v35 = vld [vmem:[#allocation44_spill] sm:$0xff] }
  0x93   :  { %1807 = vmatpush.msk.msra.mxu3 %vm4016_vm14, %v3910_v48  ;;  %vm4033_vm14 = vnez %v3854_v56  ;;  %v4070_v56 = vld [vmem:[#allocation38_spill] sm:$0xff] }
  0x94   :  { %1037 = vmatpush.msrb.mxu1 %v4030_v1  ;;  %1819 = vmatpush.msk.msrb.mxu0 %vm4033_vm14, %v3910_v48  ;;  %v4036_v1 = vld [vmem:[#allocation46_spill] sm:$0xff] }
  0x95   :  { %1808 = vmatpush.msk.msra.mxu3 %vm4017_vm0, %v3910_v48  ;;  %vm4035_vm0 = vnez %v3857_v59  ;;  %v4072_v59 = vld [vmem:[#allocation40_spill] sm:$0xff] }
  0x96   :  { %1043 = vmatpush.msrb.mxu1 %v4032_v45  ;;  %1820 = vmatpush.msk.msrb.mxu0 %vm4035_vm0, %v3910_v48  ;;  %v4038_v45 = vld [vmem:[#allocation51_spill] sm:$0xff] }
  0x97   :  { %1809 = vmatpush.msk.msra.mxu3 %vm3089_vm5, %v3910_v48  ;;  %vm4039_vm5 = vnez %v3867_v36  ;;  %v4076_v36 = vld [vmem:[#allocation49_spill] sm:$0xff] }
  0x98   :  { %1049 = vmatpush.msrb.mxu1 %v4034_v35  ;;  %1821 = vmatpush.msk.msrb.mxu0 %vm4037_vm10, %v3910_v48  ;;  %v4040_v35 = vld [vmem:[#allocation55_spill] sm:$0xff] }
  0x99   :  { %1810 = vmatpush.msk.msra.mxu3 %vm3114_vm4, %v3910_v48  ;;  %vm4041_vm4 = vnez %v3874_v16  ;;  %v4079_v16 = vld [vmem:[#allocation53_spill] sm:$0xff] }
  0x9a   :  { %1055 = vmatpush.msrb.mxu1 %v4036_v1  ;;  %1822 = vmatpush.msk.msrb.mxu0 %vm4039_vm5, %v3910_v48  ;;  %v4043_v1 = vld [vmem:[#allocation41_spill] sm:$0xff] }
  0x9b   :  { %vm4044_vm12 = vnez %v4043_v1  ;;  %v4082_v1 = vld [vmem:[#allocation56_spill] sm:$0xff] }
  0x9c   :  { %1061 = vmatpush.msrb.mxu1 %v4038_v45  ;;  %1823 = vmatpush.msk.msrb.mxu0 %vm4041_vm4, %v3910_v48  ;;  %v4046_v45 = vld [vmem:[#allocation48_spill] sm:$0xff] }
  0x9d   :  { %vm4047_vm8 = vnez %v4046_v45  ;;  %v4086_v45 = vld [vmem:[#allocation54_spill] sm:$0xff] }
  0x9e   :  { %1067 = vmatpush.msrb.mxu1 %v4040_v35  ;;  %1824 = vmatpush.msk.msrb.mxu0 %vm4044_vm12, %v3910_v48  ;;  %v4050_v35 = vld [vmem:[#allocation61_spill] sm:$0xff] }
  0xa0   :  { %1073 = vmatpush.msrb.mxu1 %v4042_v29  ;;  %1825 = vmatpush.msk.msrb.mxu0 %vm4047_vm8, %v3910_v48 }
  0xa2   :  { %1079 = vmatpush.msrb.mxu1 %v4045_v11  ;;  %1826 = vmatpush.msk.msrb.mxu0 %vm4049_vm15, %v3910_v48 }
  0xa4   :  { %1085 = vmatpush.msrb.mxu1 %v4048_v50 }
  0xa6   :  { %1091 = vmatpush.msrb.mxu1 %v4050_v35  ;;  %v4069_v35 = vld [vmem:[#allocation34_spill] sm:$0xff] }
  0xa8   :  { %1097 = vmatpush.msrb.mxu1 %v4051_v54 }
  0xb7   :  { %v314_v31 = vpop.f32.mrf.mxu0 }
  0xb8   :  { %v508_v11 = vpop.f32.mrf.mxu3 }
  0xba   :  { %v469_v4 = vpop.f32.mrf.mxu2 }
  0xc2   :  { %v415_v29 = vpop.f32.mrf.mxu1 }
  0xc3   :  { %v416_v40 = vadd.f32 %v415_v29, %v314_v31  ;;  %v4067_v31 = vld [vmem:[#allocation31_spill] sm:$0xff] }
  0xc4   :  { %v4071_v29 = vld [vmem:[#allocation35_spill] sm:$0xff] }
  0xc5   :  { %v470_v42 = vadd.f32 %v469_v4, %v416_v40  ;;  %v4052_v40 = vld [vmem:[#allocation14_spill] sm:$0xff]  ;;  %v4063_v4 = vld [vmem:[#allocation21_spill] sm:$0xff] }
  0xc7   :  { %v509_v62 = vadd.f32 %v508_v11, %v470_v42  ;;  %v4058_v42 = vld [vmem:[#allocation15_spill] sm:$0xff]  ;;  %v4073_v11 = vld [vmem:[#allocation37_spill] sm:$0xff] }
  0xd3   :  { %v577_v14 = vpop.f32.mrf.mxu0 }
  0xd4   :  { %v578_v61 = vadd.f32 %v577_v14, %v509_v62  ;;  %v4060_v62 = vld [vmem:[#allocation17_spill] sm:$0xff] }
  0xe6   :  { %v614_v25 = vpop.f32.mrf.mxu1 }
  0xe7   :  { %v615_v32 = vadd.f32 %v614_v25, %v578_v61  ;;  %v4056_v61 = vld [vmem:[#allocation13_spill] sm:$0xff] }
  0xe9   :  { %v617_v50 = vmul.f32 0.03125, %v615_v32  ;;  %v4053_v32 = vld [vmem:[#allocation16_spill] sm:$0xff] }
  0xeb   :  { %v650_v24 = vand.u32 4294901760, %v617_v50 }
  0xed   :  { %v651_v23 = vsub.f32 %v617_v50, %v650_v24  ;;  %756 = vmatmul.f32.vlgmr.msrb.gmra.mxu3 %v650_v24  ;;  %v4075_v50 = vld [vmem:[#allocation42_spill] sm:$0xff] }
  0xee   :  { %1827 = vmatpush.msk.msrb.mxu3 %vm4018_vm13, %v3910_v48 }
  0xef   :  { %810 = vmatmul.f32.vlgmr.msra.gmra.mxu0 %v651_v23  ;;  %v652_v54 = vand.u32 4294901760, %v651_v23 }
  0xf0   :  { %1828 = vmatpush.msk.msrb.mxu3 %vm4019_vm3, %v3910_v48  ;;  %1199 = vmatpush.msra.mxu0 %v4052_v40  ;;  %v4078_v40 = vld [vmem:[#allocation69_spill] sm:$0xff] }
  0xf1   :  { %849 = vmatmul.f32.vlgmr.msra.gmra.mxu1 %v652_v54  ;;  %v653_v14 = vsub.f32 %v651_v23, %v652_v54  ;;  %v4054_v23 = vld [vmem:[#allocation12_spill] sm:$0xff]  ;;  %v4077_v54 = vld [vmem:[#allocation45_spill] sm:$0xff] }
  0xf2   :  { %1829 = vmatpush.msk.msrb.mxu3 %vm4021_vm11, %v3910_v48  ;;  %1843 = vmatpush.msk.msra.mxu1 %vm4018_vm13, %v3910_v48  ;;  %vm4099_vm13 = vnez %v3946_v52  ;;  %v4116_v52 = vld [vmem:[#allocation76_spill] sm:$0xff] }
  0xf3   :  { %v654_v25 = vand.u32 4294901760, %v653_v14  ;;  %1203 = vmatpush.msra.mxu0 %v4053_v32  ;;  %v4080_v14 = vld [vmem:[#allocation50_spill] sm:$0xff]  ;;  %v4083_v32 = vld [vmem:[#allocation52_spill] sm:$0xff] }
  0xf4   :  { %1830 = vmatpush.msk.msrb.mxu3 %vm4023_vm2, %v3910_v48  ;;  %1844 = vmatpush.msk.msra.mxu1 %vm4019_vm3, %v3910_v48  ;;  %vm4088_vm3 = vnez %v3916_v27  ;;  %v4110_v27 = vld [vmem:[#allocation64_spill] sm:$0xff] }
  0xf5   :  { %655 = vmatmul.f32.vlgmr.msrb.gmra.mxu2 %v654_v25  ;;  %955 = vmatmul.f32.vlgmr.msra.gmra.mxu3 %v650_v24  ;;  %v4081_v25 = vld [vmem:[#allocation70_spill] sm:$0xff] }
  0xf6   :  { %1105 = vmatpush.msrb.mxu2 %v4054_v23  ;;  %1831 = vmatpush.msk.msrb.mxu3 %vm4025_vm7, %v3910_v48  ;;  %v4084_v23 = vld [vmem:[#allocation71_spill] sm:$0xff] }
  0xf7   :  { %1845 = vmatpush.msk.msra.mxu1 %vm4021_vm11, %v3910_v48  ;;  %1207 = vmatpush.msra.mxu0 %v4055_v13  ;;  %v4085_v13 = vld [vmem:[#allocation58_spill] sm:$0xff]  ;;  %vm4101_vm11 = vnez %v3964_v55  ;;  %v4124_v55 = vld [vmem:[#allocation85_spill] sm:$0xff] }
  0xf8   :  { %1108 = vmatpush.msrb.mxu2 %v4056_v61  ;;  %1832 = vmatpush.msk.msrb.mxu3 %vm4027_vm9, %v3910_v48  ;;  %v4087_v61 = vld [vmem:[#allocation72_spill] sm:$0xff] }
  0xf9   :  { %1846 = vmatpush.msk.msra.mxu1 %vm4023_vm2, %v3910_v48  ;;  %1211 = vmatpush.msra.mxu0 %v4057_v15  ;;  %v4089_v15 = vld [vmem:[#allocation73_spill] sm:$0xff]  ;;  %vm4100_vm2 = vnez %v3957_v20  ;;  %v4123_v20 = vld [vmem:[#allocation86_spill] sm:$0xff] }
  0xfa   :  { %1111 = vmatpush.msrb.mxu2 %v4058_v42  ;;  %1833 = vmatpush.msk.msrb.mxu3 %vm4029_vm6, %v3910_v48  ;;  %v4093_v42 = vld [vmem:[#allocation77_spill] sm:$0xff] }
  0xfb   :  { %1847 = vmatpush.msk.msra.mxu1 %vm4025_vm7, %v3910_v48  ;;  %1215 = vmatpush.msra.mxu0 %v4059_v21  ;;  %vm4092_vm7 = vnez %v3925_v60  ;;  %v4095_v21 = vld [vmem:[#allocation83_spill] sm:$0xff]  ;;  %v4115_v60 = vld [vmem:[#allocation74_spill] sm:$0xff] }
  0xfc   :  { %1114 = vmatpush.msrb.mxu2 %v4060_v62  ;;  %1834 = vmatpush.msk.msrb.mxu3 %vm4031_vm1, %v3910_v48  ;;  %v4098_v62 = vld [vmem:[#allocation43_spill] sm:$0xff] }
  0xfd   :  { %918 = vmatmul.f32.vlgmr.msra.gmra.mxu2 %v650_v24  ;;  %1848 = vmatpush.msk.msra.mxu1 %vm4027_vm9, %v3910_v48  ;;  %v4065_v24 = vld [vmem:[#allocation24_spill] sm:$0xff]  ;;  %vm4106_vm9 = vnez %v4000_v41  ;;  %v4130_v41 = vld [vmem:[#allocation90_spill] sm:$0xff] }
  0xfe   :  { %1117 = vmatpush.msrb.mxu2 %v4061_v26  ;;  %1835 = vmatpush.msk.msrb.mxu3 %vm4033_vm14, %v3910_v48 }
  0xff   :  { %1849 = vmatpush.msk.msra.mxu1 %vm4029_vm6, %v3910_v48  ;;  %1219 = vmatpush.msra.mxu0 %v4062_v30  ;;  %vm4102_vm6 = vnez %v3970_v12  ;;  %v4126_v12 = vld [vmem:[#allocation87_spill] sm:$0xff] }
 0x100   :  { %1120 = vmatpush.msrb.mxu2 %v4063_v4  ;;  %1836 = vmatpush.msk.msrb.mxu3 %vm4035_vm0, %v3910_v48 }
 0x101   :  { %1850 = vmatpush.msk.msra.mxu1 %vm4031_vm1, %v3910_v48  ;;  %1223 = vmatpush.msra.mxu0 %v4064_v34  ;;  %vm4103_vm1 = vnez %v3975_v28  ;;  %v4129_v28 = vld [vmem:[#allocation91_spill] sm:$0xff] }
 0x102   :  { %1123 = vmatpush.msrb.mxu2 %v4065_v24  ;;  %1837 = vmatpush.msk.msrb.mxu3 %vm4037_vm10, %v3910_v48  ;;  %v1916_v24 = vld [vmem:[#allocation2] sm:$0xff] }
 0x103   :  { %1851 = vmatpush.msk.msra.mxu1 %vm4033_vm14, %v3910_v48  ;;  %1227 = vmatpush.msra.mxu0 %v4066_v39  ;;  %vm4107_vm14 = vnez %v4007_v22 }
 0x104   :  { %1126 = vmatpush.msrb.mxu2 %v4067_v31  ;;  %1838 = vmatpush.msk.msrb.mxu3 %vm4039_vm5, %v3910_v48 }
 0x105   :  { %1852 = vmatpush.msk.msra.mxu1 %vm4035_vm0, %v3910_v48  ;;  %1231 = vmatpush.msra.mxu0 %v4068_v49  ;;  %vm4108_vm0 = vnez %v4011_v43 }
 0x106   :  { %1129 = vmatpush.msrb.mxu2 %v4069_v35  ;;  %1839 = vmatpush.msk.msrb.mxu3 %vm4041_vm4, %v3910_v48 }
 0x107   :  { %1853 = vmatpush.msk.msra.mxu1 %vm4037_vm10, %v3910_v48  ;;  %1235 = vmatpush.msra.mxu0 %v4070_v56  ;;  %vm4097_vm10 = vnez %v3938_v6  ;;  %v4121_v6 = vld [vmem:[#allocation84_spill] sm:$0xff] }
 0x108   :  { %1132 = vmatpush.msrb.mxu2 %v4071_v29  ;;  %1840 = vmatpush.msk.msrb.mxu3 %vm4044_vm12, %v3910_v48 }
 0x109   :  { %1854 = vmatpush.msk.msra.mxu1 %vm4039_vm5, %v3910_v48  ;;  %1239 = vmatpush.msra.mxu0 %v4072_v59  ;;  %vm4104_vm5 = vnez %v3984_v46  ;;  %v4125_v46 = vld [vmem:[#allocation11_spill] sm:$0xff] }
 0x10a   :  { %1135 = vmatpush.msrb.mxu2 %v4073_v11  ;;  %1841 = vmatpush.msk.msrb.mxu3 %vm4047_vm8, %v3910_v48  ;;  %v4131_v11 = vld [vmem:[#allocation93_spill] sm:$0xff] }
 0x10b   :  { %1855 = vmatpush.msk.msra.mxu1 %vm4041_vm4, %v3910_v48  ;;  %1243 = vmatpush.msra.mxu0 %v4074_v5  ;;  %vm4105_vm4 = vnez %v3991_v58  ;;  %v4127_v58 = vld [vmem:[#allocation89_spill] sm:$0xff]  ;;  %v4132_v5 = vld [vmem:[#allocation92_spill] sm:$0xff] }
 0x10c   :  { %1138 = vmatpush.msrb.mxu2 %v4075_v50  ;;  %1842 = vmatpush.msk.msrb.mxu3 %vm4049_vm15, %v3910_v48 }
 0x10d   :  { %1856 = vmatpush.msk.msra.mxu1 %vm4044_vm12, %v3910_v48  ;;  %1247 = vmatpush.msra.mxu0 %v4076_v36  ;;  %vm4096_vm12 = vnez %v3935_v10  ;;  %v4119_v10 = vld [vmem:[#allocation81_spill] sm:$0xff] }
 0x10e   :  { %1141 = vmatpush.msrb.mxu2 %v4077_v54  ;;  %1360 = vmatpush.msra.mxu3 %v4078_v40 }
 0x10f   :  { %1857 = vmatpush.msk.msra.mxu1 %vm4047_vm8, %v3910_v48  ;;  %1251 = vmatpush.msra.mxu0 %v4079_v16  ;;  %vm4094_vm8 = vnez %v3930_v8  ;;  %v4118_v8 = vld [vmem:[#allocation78_spill] sm:$0xff] }
 0x110   :  { %1144 = vmatpush.msrb.mxu2 %v4080_v14  ;;  %1366 = vmatpush.msra.mxu3 %v4081_v25 }
 0x111   :  { %1858 = vmatpush.msk.msra.mxu1 %vm4049_vm15, %v3910_v48  ;;  %1255 = vmatpush.msra.mxu0 %v4082_v1  ;;  %vm4090_vm15 = vnez %v3920_v3  ;;  %v4111_v3 = vld [vmem:[#allocation65_spill] sm:$0xff] }
 0x112   :  { %1147 = vmatpush.msrb.mxu2 %v4083_v32  ;;  %1372 = vmatpush.msra.mxu3 %v4084_v23 }
 0x113   :  { %1259 = vmatpush.msra.mxu0 %v4085_v13 }
 0x114   :  { %1150 = vmatpush.msrb.mxu2 %v4086_v45  ;;  %1378 = vmatpush.msra.mxu3 %v4087_v61 }
 0x116   :  { %1859 = vmatpush.msk.msra.mxu2 %vm4088_vm3, %v3910_v48  ;;  %1384 = vmatpush.msra.mxu3 %v4089_v15 }
 0x118   :  { %1860 = vmatpush.msk.msra.mxu2 %vm4090_vm15, %v3910_v48  ;;  %1390 = vmatpush.msra.mxu3 %v4091_v37 }
 0x11a   :  { %1861 = vmatpush.msk.msra.mxu2 %vm4092_vm7, %v3910_v48  ;;  %1396 = vmatpush.msra.mxu3 %v4093_v42 }
 0x11c   :  { %1862 = vmatpush.msk.msra.mxu2 %vm4094_vm8, %v3910_v48  ;;  %1402 = vmatpush.msra.mxu3 %v4095_v21 }
 0x11e   :  { %1863 = vmatpush.msk.msra.mxu2 %vm4096_vm12, %v3910_v48  ;;  %1408 = vmatpush.msra.mxu3 %v3003_v47 }
 0x120   :  { %1864 = vmatpush.msk.msra.mxu2 %vm4097_vm10, %v3910_v48  ;;  %1414 = vmatpush.msra.mxu3 %v4098_v62 }
 0x122   :  { %1865 = vmatpush.msk.msra.mxu2 %vm4099_vm13, %v3910_v48  ;;  %1420 = vmatpush.msra.mxu3 %v3042_v9 }
 0x124   :  { %1866 = vmatpush.msk.msra.mxu2 %vm4100_vm2, %v3910_v48  ;;  %1426 = vmatpush.msra.mxu3 %v3083_v18 }
 0x126   :  { %1867 = vmatpush.msk.msra.mxu2 %vm4101_vm11, %v3910_v48  ;;  %1432 = vmatpush.msra.mxu3 %v3108_v51 }
 0x128   :  { %1868 = vmatpush.msk.msra.mxu2 %vm4102_vm6, %v3910_v48  ;;  %1438 = vmatpush.msra.mxu3 %v3137_v0 }
 0x12a   :  { %1869 = vmatpush.msk.msra.mxu2 %vm4103_vm1, %v3910_v48  ;;  %1444 = vmatpush.msra.mxu3 %v3153_v2 }
 0x12c   :  { %1870 = vmatpush.msk.msra.mxu2 %vm4104_vm5, %v3910_v48  ;;  %1450 = vmatpush.msra.mxu3 %v3163_v38 }
 0x12e   :  { %1871 = vmatpush.msk.msra.mxu2 %vm4105_vm4, %v3910_v48 }
 0x130   :  { %1872 = vmatpush.msk.msra.mxu2 %vm4106_vm9, %v3910_v48 }
 0x132   :  { %1873 = vmatpush.msk.msra.mxu2 %vm4107_vm14, %v3910_v48 }
 0x134   :  { %1874 = vmatpush.msk.msra.mxu2 %vm4108_vm0, %v3910_v48 }
 0x16c   :  { %v811_v38 = vpop.f32.mrf.mxu0 }
 0x16e   :  { %v850_v0 = vpop.f32.mrf.mxu1 }
 0x170   :  { %v757_v9 = vpop.f32.mrf.mxu3 }
 0x178   :  { %v656_v47 = vpop.f32.mrf.mxu2  ;;  %v956_v4 = vpop.f32.mrf.mxu3 }
 0x179   :  { %v758_v18 = vadd.f32 %v757_v9, %v656_v47 }
 0x17b   :  { %v812_v51 = vadd.f32 %v811_v38, %v758_v18 }
 0x17d   :  { %v851_v2 = vadd.f32 %v850_v0, %v812_v51 }
 0x180   :  { %v919_v26 = vpop.f32.mrf.mxu2 }
 0x181   :  { %v920_v30 = vadd.f32 %v919_v26, %v851_v2 }
 0x183   :  { %v957_v34 = vadd.f32 %v956_v4, %v920_v30 }
 0x185   :  { %v3517_v39 = vsub.f32 %v1916_v24, %v957_v34 }
 0x187   :  { %v960_v31 = vmul.f32 %v3517_v39, %v3517_v39 }
 0x189   :  { %v993_v49 = vand.u32 4294901760, %v960_v31 }
 0x18b   :  { %1099 = vmatmul.f32.vlgmr.msrb.gmra.mxu1 %v993_v49  ;;  %v994_v35 = vsub.f32 %v960_v31, %v993_v49 }
 0x18c   :  { %1875 = vmatpush.msk.msrb.mxu1 %vm4088_vm3, %v3910_v48 }
 0x18d   :  { %1153 = vmatmul.f32.vlgmr.msrb.gmra.mxu2 %v994_v35  ;;  %v995_v56 = vand.u32 4294901760, %v994_v35 }
 0x18e   :  { %1876 = vmatpush.msk.msrb.mxu1 %vm4090_vm15, %v3910_v48  ;;  %1552 = vmatpush.msrb.mxu2 %v2708_v53  ;;  %v4109_v53 = vld [vmem:[#allocation63_spill] sm:$0xff] }
 0x18f   :  { %1192 = vmatmul.f32.vlgmr.msrb.gmra.mxu3 %v995_v56  ;;  %v996_v29 = vsub.f32 %v994_v35, %v995_v56  ;;  %v1912_v56 = vld [vmem:[#allocation5] ss:$0 sm:$0xff] }
 0x190   :  { %1877 = vmatpush.msk.msrb.mxu1 %vm4092_vm7, %v3910_v48  ;;  %1891 = vmatpush.msk.msrb.mxu3 %vm4088_vm3, %v3910_v48 }
 0x191   :  { %v997_v59 = vand.u32 4294901760, %v996_v29  ;;  %1556 = vmatpush.msrb.mxu2 %v2724_v7  ;;  %v4120_v7 = vld [vmem:[#allocation79_spill] sm:$0xff] }
 0x192   :  { %1878 = vmatpush.msk.msrb.mxu1 %vm4094_vm8, %v3910_v48  ;;  %1892 = vmatpush.msk.msrb.mxu3 %vm4090_vm15, %v3910_v48 }
 0x193   :  { %998 = vmatmul.f32.vlgmr.msrb.gmra.mxu0 %v997_v59  ;;  %1298 = vmatmul.f32.vlgmr.msra.gmra.mxu1 %v993_v49  ;;  %v1913_v59 = vld [vmem:[%s3658_s2] ss:$0 sm:$0xff] }
 0x194   :  { %1458 = vmatpush.msrb.mxu0 %v4109_v53  ;;  %1879 = vmatpush.msk.msrb.mxu1 %vm4096_vm12, %v3910_v48 }
 0x195   :  { %1893 = vmatpush.msk.msrb.mxu3 %vm4092_vm7, %v3910_v48  ;;  %1560 = vmatpush.msrb.mxu2 %v2747_v17  ;;  %v4112_v17 = vld [vmem:[#allocation66_spill] sm:$0xff] }
 0x196   :  { %1461 = vmatpush.msrb.mxu0 %v4110_v27  ;;  %1880 = vmatpush.msk.msrb.mxu1 %vm4097_vm10, %v3910_v48 }
 0x197   :  { %1894 = vmatpush.msk.msrb.mxu3 %vm4094_vm8, %v3910_v48  ;;  %1564 = vmatpush.msrb.mxu2 %v2758_v57  ;;  %v4113_v57 = vld [vmem:[#allocation67_spill] sm:$0xff] }
 0x198   :  { %1464 = vmatpush.msrb.mxu0 %v4111_v3  ;;  %1881 = vmatpush.msk.msrb.mxu1 %vm4099_vm13, %v3910_v48 }
 0x199   :  { %1895 = vmatpush.msk.msrb.mxu3 %vm4096_vm12, %v3910_v48  ;;  %1568 = vmatpush.msrb.mxu2 %v2773_v33  ;;  %v4114_v33 = vld [vmem:[#allocation68_spill] sm:$0xff] }
 0x19a   :  { %1467 = vmatpush.msrb.mxu0 %v4112_v17  ;;  %1882 = vmatpush.msk.msrb.mxu1 %vm4100_vm2, %v3910_v48 }
 0x19b   :  { %1261 = vmatmul.f32.vlgmr.msra.gmra.mxu0 %v993_v49  ;;  %1896 = vmatpush.msk.msrb.mxu3 %vm4097_vm10, %v3910_v48 }
 0x19c   :  { %1470 = vmatpush.msrb.mxu0 %v4113_v57  ;;  %1883 = vmatpush.msk.msrb.mxu1 %vm4101_vm11, %v3910_v48 }
 0x19d   :  { %1897 = vmatpush.msk.msrb.mxu3 %vm4099_vm13, %v3910_v48  ;;  %1572 = vmatpush.msrb.mxu2 %v2782_v44  ;;  %v4117_v44 = vld [vmem:[#allocation80_spill] sm:$0xff] }
 0x19e   :  { %1473 = vmatpush.msrb.mxu0 %v4114_v33  ;;  %1884 = vmatpush.msk.msrb.mxu1 %vm4102_vm6, %v3910_v48 }
 0x19f   :  { %1898 = vmatpush.msk.msrb.mxu3 %vm4100_vm2, %v3910_v48  ;;  %1576 = vmatpush.msrb.mxu2 %v2847_v19  ;;  %v4122_v19 = vld [vmem:[#allocation82_spill] sm:$0xff] }
 0x1a0   :  { %1476 = vmatpush.msrb.mxu0 %v4115_v60  ;;  %1885 = vmatpush.msk.msrb.mxu1 %vm4103_vm1, %v3910_v48 }
 0x1a1   :  { %1899 = vmatpush.msk.msrb.mxu3 %vm4101_vm11, %v3910_v48  ;;  %1580 = vmatpush.msrb.mxu2 %v2917_v63  ;;  %v4128_v63 = vld [vmem:[#allocation88_spill] sm:$0xff] }
 0x1a2   :  { %1479 = vmatpush.msrb.mxu0 %v4116_v52  ;;  %1886 = vmatpush.msk.msrb.mxu1 %vm4104_vm5, %v3910_v48 }
 0x1a3   :  { %1900 = vmatpush.msk.msrb.mxu3 %vm4102_vm6, %v3910_v48  ;;  %1584 = vmatpush.msrb.mxu2 %v4117_v44 }
 0x1a4   :  { %1482 = vmatpush.msrb.mxu0 %v4118_v8  ;;  %1887 = vmatpush.msk.msrb.mxu1 %vm4105_vm4, %v3910_v48 }
 0x1a5   :  { %1901 = vmatpush.msk.msrb.mxu3 %vm4103_vm1, %v3910_v48  ;;  %1588 = vmatpush.msrb.mxu2 %v4119_v10 }
 0x1a6   :  { %1485 = vmatpush.msrb.mxu0 %v4120_v7  ;;  %1888 = vmatpush.msk.msrb.mxu1 %vm4106_vm9, %v3910_v48 }
 0x1a7   :  { %1902 = vmatpush.msk.msrb.mxu3 %vm4104_vm5, %v3910_v48  ;;  %1592 = vmatpush.msrb.mxu2 %v4121_v6 }
 0x1a8   :  { %1488 = vmatpush.msrb.mxu0 %v4122_v19  ;;  %1889 = vmatpush.msk.msrb.mxu1 %vm4107_vm14, %v3910_v48 }
 0x1a9   :  { %1903 = vmatpush.msk.msrb.mxu3 %vm4105_vm4, %v3910_v48  ;;  %1596 = vmatpush.msrb.mxu2 %v4123_v20 }
 0x1aa   :  { %1491 = vmatpush.msrb.mxu0 %v4124_v55  ;;  %1890 = vmatpush.msk.msrb.mxu1 %vm4108_vm0, %v3910_v48 }
 0x1ab   :  { %1904 = vmatpush.msk.msrb.mxu3 %vm4106_vm9, %v3910_v48  ;;  %1600 = vmatpush.msrb.mxu2 %v4125_v46 }
 0x1ac   :  { %1494 = vmatpush.msrb.mxu0 %v4126_v12 }
 0x1ad   :  { %1905 = vmatpush.msk.msrb.mxu3 %vm4107_vm14, %v3910_v48  ;;  %1604 = vmatpush.msrb.mxu2 %v4127_v58 }
 0x1ae   :  { %1497 = vmatpush.msrb.mxu0 %v4128_v63 }
 0x1af   :  { %1906 = vmatpush.msk.msrb.mxu3 %vm4108_vm0, %v3910_v48  ;;  %1608 = vmatpush.msrb.mxu2 %v4129_v28 }
 0x1b0   :  { %1500 = vmatpush.msrb.mxu0 %v4130_v41 }
 0x1b1   :  { %1612 = vmatpush.msrb.mxu2 %v4131_v11 }
 0x1b2   :  { %1503 = vmatpush.msrb.mxu0 %v4132_v5 }
 0x208   :  { %v1100_v50 = vpop.f32.mrf.mxu1 }
 0x210   :  { %v999_v36 = vpop.f32.mrf.mxu0  ;;  %v1154_v54 = vpop.f32.mrf.mxu2 }
 0x211   :  { %v1101_v22 = vadd.f32 %v1100_v50, %v999_v36  ;;  %v1299_v32 = vpop.f32.mrf.mxu1 }
 0x212   :  { %v1193_v16 = vpop.f32.mrf.mxu3 }
 0x213   :  { %v1155_v40 = vadd.f32 %v1154_v54, %v1101_v22 }
 0x215   :  { %v1194_v14 = vadd.f32 %v1193_v16, %v1155_v40 }
 0x218   :  { %v1262_v25 = vpop.f32.mrf.mxu0 }
 0x219   :  { %v1263_v1 = vadd.f32 %v1262_v25, %v1194_v14 }
 0x21b   :  { %v1300_v43 = vadd.f32 %v1299_v32, %v1263_v1 }
 0x21d   :  { %v1302_v48 = vmul.f32 0.03125, %v1300_v43 }
 0x21f   :  { %v1303_v23 = vadd.f32 1e-05, %v1302_v48 }
 0x221   :  { %1914 = vrsqrt.f32 %v1303_v23  ;;  %vm1310_vm15 = vweird.f32 %v1303_v23 }
 0x227   :  { %v1915_v13 = vpop.eup %1914 }
 0x228   :  { %v1305_v45 = vmul.f32 %v1915_v13, %v1303_v23  ;;  %vm1311_vm3 = vweird.f32 %v1915_v13 }
 0x229   :  { %vm1312_vm7 = vmor %vm1310_vm15, %vm1311_vm3 }
 0x22a   :  { %v1306_v61 = vmul.f32 %v1915_v13, %v1305_v45 }
 0x22c   :  { %v1307_v15 = vmul.f32 0.5, %v1306_v61 }
 0x22e   :  { %v1308_v37 = vsub.f32 1.5, %v1307_v15 }
 0x230   :  { %v1309_v42 = vmul.f32 %v1915_v13, %v1308_v37 }
 0x232   :  { %v1313_v21 = vsel %vm1312_vm7, %v1915_v13, %v1309_v42 }
 0x233   :  { %v1346_v62 = vand.u32 4294901760, %v1313_v21 }
 0x235   :  { %1452 = vmatmul.f32.vlgmr.msra.gmra.mxu3 %v1346_v62  ;;  %v1347_v9 = vsub.f32 %v1313_v21, %v1346_v62 }
 0x237   :  { %1506 = vmatmul.f32.vlgmr.msrb.gmra.mxu0 %v1347_v9  ;;  %v1348_v47 = vand.u32 4294901760, %v1347_v9 }
 0x239   :  { %1545 = vmatmul.f32.vlgmr.msrb.gmra.mxu1 %v1348_v47  ;;  %v1349_v18 = vsub.f32 %v1347_v9, %v1348_v47 }
 0x23b   :  { %v1350_v38 = vand.u32 4294901760, %v1349_v18 }
 0x23d   :  { %1351 = vmatmul.f32.vlgmr.msra.gmra.mxu2 %v1350_v38  ;;  %1651 = vmatmul.f32.vlgmr.msrb.gmra.mxu3 %v1346_v62 }
 0x245   :  { %1614 = vmatmul.f32.vlgmr.msrb.gmra.mxu2 %v1346_v62 }
 0x2b4   :  { %v1507_v26 = vpop.f32.mrf.mxu0 }
 0x2b6   :  { %v1546_v4 = vpop.f32.mrf.mxu1 }
 0x2b8   :  { %v1453_v51 = vpop.f32.mrf.mxu3 }
 0x2c0   :  { %v1352_v0 = vpop.f32.mrf.mxu2  ;;  %v1652_v49 = vpop.f32.mrf.mxu3 }
 0x2c1   :  { %v1454_v2 = vadd.f32 %v1453_v51, %v1352_v0 }
 0x2c3   :  { %v1508_v30 = vadd.f32 %v1507_v26, %v1454_v2 }
 0x2c5   :  { %v1547_v34 = vadd.f32 %v1546_v4, %v1508_v30 }
 0x2c8   :  { %v1615_v24 = vpop.f32.mrf.mxu2 }
 0x2c9   :  { %v1616_v31 = vadd.f32 %v1615_v24, %v1547_v34 }
 0x2cb   :  { %v1653_v35 = vadd.f32 %v1652_v49, %v1616_v31 }
 0x2cd   :  { %v1655_v29 = vmul.f32 %v1653_v35, %v3517_v39 }
 0x2cf   :  { %v1659_v53 = vmul.f32 %v1912_v56, %v1655_v29 }
 0x2d1   :  { %v1663_v27 = vadd.f32 %v1913_v59, %v1659_v53 }
 0x2d3   :  { %1664 = vst [vmem:[#allocation7] sm:$0xff] %v1663_v27 }
 0x2d4   :  { %1675 = dma.vmem_to_hbm [thread:$0]  %s1671_s23, 128, %s1673_s26, [#allocation4]  }
 0x2d5   :  { %1993 = dma.done.wait [#allocation4], 128  }
 0x2d6   :  { %1994 = vsyncadd [#allocation4], 4294967168 }
 0x2d7   :  { %1680 = vsyncpa [#allocation3], 1 }
 0x2d8   :  { %1681 = vsyncpa [#allocation6], 1 }
 0x2d9   :  { %1682 = vsyncpa [#allocation4], 1 }

</bundles_post_ra>
